<compile_context>
chip_gen: v6e
topology: v6e:2x2x1
jax: 0.10.0
libtpu: 0.0.40
codegen_flags: <defaults>
</compile_context>

<pallas_src>
import functools

import jax
import jax.numpy as jnp
from jax.experimental import pallas as pl
from jax.experimental.pallas import tpu as pltpu

# ----------------------------------------------------------------------------
# Small synthetic config (consistent with the module defaults, scaled down)
# ----------------------------------------------------------------------------
B = 2              # batch
N = 64             # input points
IN_CH = 3          # in_channels (feature channels of x)
SAMPLE_RATIO = 0.25
GROUP_K = 8        # group_size
EMBED = 32         # embed_dim  (NOTE: when scaling, keep E and 2E multiples of
                   # 128 so h1..h4 are lane-dense and MXU N-util is full)
RADIUS = 0.5       # ball-query radius (module default 0.1; larger so groups
                   # are non-degenerate at N=64)
EPS = 1e-5         # BatchNorm eps

M = int(N * SAMPLE_RATIO)   # number of sampled centers
C0 = 3 + IN_CH              # CHANNEL_MAP['dp_df'](in_channels) = 3 + in_channels


# ----------------------------------------------------------------------------
# Plain-JAX glue: sampling, grouping, gathers (data-dependent indexing).
# TODO(synk): FPS / ball-query are sequential argmax / first-k-within-radius
# selections with no clean Pallas equivalent; kept in plain JAX (inside the
# jitted wrapper so XLA fuses them).  Folding the neighbour gather into the
# kernel (PrefetchScalarGridSpec + pl.Element row gathers) only pays once
# B*M*K is large enough to amortize per-row DMA overhead.
# ----------------------------------------------------------------------------
def furthest_point_sample(p, m):
    """Exact FPS semantics of the pointnet2 CUDA kernel (start at index 0)."""
    b, n, _ = p.shape
    idx = jnp.zeros((b, m), dtype=jnp.int32)
    dist = jnp.full((b, n), 1e10, dtype=jnp.float32)
    last = jnp.zeros((b,), dtype=jnp.int32)

    def body(i, carry):
        idx, dist, last = carry
        last_p = jax.vmap(lambda a, j: a[j])(p, last)            # (B, 3)
        d = jnp.sum((p - last_p[:, None, :]) ** 2, axis=-1)      # (B, N)
        dist = jnp.minimum(dist, d)
        nxt = jnp.argmax(dist, axis=-1).astype(jnp.int32)
        idx = idx.at[:, i].set(nxt)
        return idx, dist, nxt

    idx, _, _ = jax.lax.fori_loop(1, m, body, (idx, dist, last))
    return idx                                                   # (B, M)


def ball_query(center, p, radius, k):
    """pointnet2 ball_query: first k point indices (in point order) with
    d^2 < r^2; unfilled slots are padded with the first found index."""
    b, m, _ = center.shape
    n = p.shape[1]
    d2 = jnp.sum((center[:, :, None, :] - p[:, None, :, :]) ** 2, axis=-1)  # (B,M,N)
    mask = d2 < radius * radius
    rank = jnp.cumsum(mask.astype(jnp.int32), axis=-1) - 1
    n_ids = jnp.arange(n, dtype=jnp.int32)
    slots = jnp.arange(k, dtype=jnp.int32)
    hit = mask[..., None] & (rank[..., None] == slots[None, None, None, :])
    cand = jnp.where(hit, n_ids[None, None, :, None], n)
    idx = jnp.min(cand, axis=2).astype(jnp.int32)                # (B, M, K)
    first = idx[..., :1]
    idx = jnp.where(idx >= n, first, idx)
    idx = jnp.where(idx >= n, 0, idx)   # only if no neighbour at all (cannot happen)
    return idx


def gather_points(pts, idx):
    """pts: (B, N, D), idx: (B, ...) int -> (B, ..., D)."""
    return jax.vmap(lambda a, i: a[i])(pts, idx)


# ----------------------------------------------------------------------------
# Pallas kernel: conv1 -> pool/concat -> conv2 -> pool   (all 1x1 convs)
# ----------------------------------------------------------------------------
def _embed_kernel(f_ref, w1_ref, w2_ref, w3_ref, w4_ref, vec_ref, o_ref):
    # f_ref: (R, C0) bf16, rows K-major (row = k*(B*M) + group).
    # o_ref: (G, E) f32.
    r = f_ref.shape[0]
    e = EMBED
    k = GROUP_K
    g = r // k

    # Per-channel parameter slab (6, 2E):
    # rows = [g1|0, be1|0, b2|0, g3, be3, b4|0]  -- prefix lane slices only.
    vec = vec_ref[...]
    g1 = vec[0:1, :e]
    be1 = vec[1:2, :e]
    b2 = vec[2:3, :e]
    g3 = vec[3:4, :]
    be3 = vec[4:5, :]
    b4 = vec[5:6, :e]

    inv_r = 1.0 / float(r)   # static constant: avoids a runtime divide

    def bn_relu(h, gamma, beta):
        # Train-mode BatchNorm2d (biased variance over all B*M*K rows), f32,
        # *centered* two-pass variance for parity with the f32 torch reference,
        # fused with ReLU.
        mean = jnp.sum(h, axis=0, keepdims=True) * inv_r
        hc = h - mean
        var = jnp.sum(hc * hc, axis=0, keepdims=True) * inv_r
        scale = jax.lax.rsqrt(var + EPS) * gamma             # (1, C)
        return jnp.maximum(hc * scale + beta, 0.0)

    # NOTE: f is lane-padded C0=6 -> 128; negligible at R=256 but the dominant
    # HBM stream once B*M*K grows (budget bandwidth on padded bytes then).
    f = f_ref[...]                                           # (R, C0) bf16

    # conv1[0]: 1x1 conv (bias=False) -> BN -> ReLU     [bf16 MXU, f32 accum]
    h1 = bn_relu(jnp.dot(f, w1_ref[...], preferred_element_type=jnp.float32),
                 g1, be1)
    # conv1[1]: 1x1 conv + bias (no norm / act)
    h2 = jnp.dot(h1.astype(jnp.bfloat16), w2_ref[...],
                 preferred_element_type=jnp.float32) + b2    # (R, E) f32

    # max-pool over the group axis.  K-major rows => reduce over the *leading*
    # axis: K-1 full-slab VPU maxima over (G, E) slabs (no XLU reduction).
    pooled = jnp.max(h2.reshape(k, g, e), axis=0)            # (G, E)

    # torch: fj = cat([max_pool(fj).expand(K), fj], dim=1); conv2[0] on it is
    # a split matmul:  cat @ W3 == pooled @ W3[:E] + fj @ W3[E:].
    # W3 is sliced directly on the Ref (static, tile-aligned: E=32 is a
    # multiple of the bf16 sublane pack of 16) -> zero-cost views.
    part_f = jnp.dot(h2.astype(jnp.bfloat16), w3_ref[e:, :],
                     preferred_element_type=jnp.float32)     # (R, 2E)
    part_p = jnp.dot(pooled.astype(jnp.bfloat16), w3_ref[:e, :],
                     preferred_element_type=jnp.float32)     # (G, 2E)
    h3_pre = (part_f.reshape(k, g, 2 * e) + part_p[None, :, :]).reshape(r, 2 * e)

    # conv2[0]: (1x1 conv above) -> BN -> ReLU
    h3 = bn_relu(h3_pre, g3, be3)

    # conv2[1]: 1x1 conv + bias (no norm / act), then final max-pool over K.
    h4 = jnp.dot(h3.astype(jnp.bfloat16), w4_ref[...],
                 preferred_element_type=jnp.float32) + b4    # (R, E)
    # Natural (G, E) writeback: at this size the masked store is ~4 KiB and
    # cheaper than an in-kernel cross-lane repack.
    o_ref[...] = jnp.max(h4.reshape(k, g, e), axis=0)        # (G, E)


def _full_spec(shape):
    nd = len(shape)
    return pl.BlockSpec(shape, lambda i, nd=nd: (0,) * nd)


# ----------------------------------------------------------------------------
# One-time packing of kernel-ready parameters (bf16 weights + (6, 2E) slab):
# avoids re-casting / re-concatenating f32 weights on every forward call.
# ----------------------------------------------------------------------------
def pack_params(params):
    bf = jnp.bfloat16

    def _pad_to_2e(v):                                      # (1, E) -> (1, 2E)
        return jnp.concatenate([v, jnp.zeros_like(v)], axis=1)

    vec = jnp.concatenate([_pad_to_2e(params['g1']),
                           _pad_to_2e(params['be1']),
                           _pad_to_2e(params['b2']),
                           params['g3'],
                           params['be3'],
                           _pad_to_2e(params['b4'])], axis=0).astype(jnp.float32)
    return dict(w1=params['w1'].astype(bf), w2=params['w2'].astype(bf),
                w3=params['w3'].astype(bf), w4=params['w4'].astype(bf),
                vec=vec)


# ----------------------------------------------------------------------------
# Jitted forward pass (glue + Pallas kernel).
# ----------------------------------------------------------------------------
@jax.jit
def point_patch_embed(p, x, kparams):
    """Forward pass of PointPatchEmbed (feature_type='dp_df', reduction='max')."""
    b, n, _ = p.shape
    m = int(n * SAMPLE_RATIO)

    idx = furthest_point_sample(p, m)                     # (B, M)

    # Gather [p | x^T] once at the centers and once at the neighbours:
    # feat = grouped - centers broadcast gives cat([dp, df]) directly
    # (relative_xyz=True, feature_type='dp_df').
    xt = jnp.transpose(x, (0, 2, 1))                      # (B, N, C) channels-last
    px = jnp.concatenate([p, xt], axis=-1)                # (B, N, 3 + C)
    centers = gather_points(px, idx)                      # (B, M, 3 + C)
    center_p = centers[..., :3]                           # (B, M, 3)

    nidx = ball_query(center_p, p, RADIUS, GROUP_K)       # (B, M, K)
    grouped = gather_points(px, nidx)                     # (B, M, K, 3 + C)
    feat = grouped - centers[:, :, None, :]               # (B, M, K, C0)

    g = b * m
    r = g * GROUP_K
    # K-major reshapes split the leading sublane axis; require G sublane
    # alignment so they stay free (no relayout copies) inside the kernel.
    assert g % 8 == 0, "B*M must be a multiple of 8 for free K-major pooling"

    # K-major row order (row = k*(B*M) + group) so the kernel pools over the
    # leading axis; cast to bf16 to halve the input DMA and feed the MXU.
    f2d = (feat.transpose(2, 0, 1, 3)
               .reshape(r, C0)
               .astype(jnp.bfloat16))

    ins = (f2d, kparams['w1'], kparams['w2'], kparams['w3'], kparams['w4'],
           kparams['vec'])

    # TODO(synk): when B*M*K grows beyond a few thousand rows, replace the
    # grid=(1,) monolith with a group-axis grid marked "parallel" (v7x has two
    # TensorCores), with BN statistics computed in a separate pass or passed
    # in via SMEM, weights block-invariant (constant index_map) and the f2d
    # stream Buffered(3); size row tiles against v7x's 64 MiB physical /
    # v5e's 16 MiB default-scoped VMEM and set vmem_limit_bytes explicitly.
    out2d = (g, EMBED)
    out = pl.pallas_call(
        _embed_kernel,
        out_shape=jax.ShapeDtypeStruct(out2d, jnp.float32),
        grid=(1,),
        in_specs=[_full_spec(a.shape) for a in ins],
        out_specs=_full_spec(out2d),
        compiler_params=pltpu.CompilerParams(dimension_semantics=("arbitrary",)),
    )(*ins)

    out_f = (out.reshape(b, m, EMBED)
                .transpose(0, 2, 1))          # (B, embed_dim, M) — torch layout
    return [p, center_p], [x, out_f]


# ----------------------------------------------------------------------------
# Deterministic parameter init (shapes follow the module's __init__ with
# layers=4: channels = [C0, E, E, 2E(x2), E]; bias only where no norm follows).
# Weights are stored pre-transposed as (C_in, C_out) for the kernel matmuls.
# ----------------------------------------------------------------------------
def init_params(key):
    ks = jax.random.split(key, 6)

    def conv_w(k, cin, cout):
        bound = 1.0 / jnp.sqrt(float(cin))
        return jax.random.uniform(k, (cin, cout), jnp.float32, -bound, bound)

    w1 = conv_w(ks[0], C0, EMBED)                    # conv1[0], bias=False (has BN)
    w2 = conv_w(ks[1], EMBED, EMBED)                 # conv1[1], bias=True
    b2 = jax.random.uniform(ks[2], (1, EMBED), jnp.float32,
                            -1.0 / jnp.sqrt(float(EMBED)), 1.0 / jnp.sqrt(float(EMBED)))
    w3 = conv_w(ks[3], 2 * EMBED, 2 * EMBED)         # conv2[0], bias=False (has BN)
    w4 = conv_w(ks[4], 2 * EMBED, EMBED)             # conv2[1], bias=True
    b4 = jax.random.uniform(ks[5], (1, EMBED), jnp.float32,
                            -1.0 / jnp.sqrt(float(2 * EMBED)), 1.0 / jnp.sqrt(float(2 * EMBED)))

    return dict(
        w1=w1, w2=w2, b2=b2,
        # W3 kept whole; rows [:E] multiply the pooled half of the concat,
        # rows [E:] the per-point half (concat order is [pool, fj]).
        w3=w3, w4=w4, b4=b4,
        g1=jnp.ones((1, EMBED), jnp.float32), be1=jnp.zeros((1, EMBED), jnp.float32),
        g3=jnp.ones((1, 2 * EMBED), jnp.float32), be3=jnp.zeros((1, 2 * EMBED), jnp.float32),
    )


if __name__ == "__main__":
    key = jax.random.PRNGKey(0)
    kp, kx, kw = jax.random.split(key, 3)
    p = jax.random.uniform(kp, (B, N, 3), jnp.float32)       # points in the unit cube
    x = jax.random.normal(kx, (B, IN_CH, N), jnp.float32)    # per-point features (B, C, N)
    params = init_params(kw)
    kparams = pack_params(params)                            # one-time bf16 pack

    (p_out, center_p), (x_out, out_f) = point_patch_embed(p, x, kparams)
    jax.block_until_ready(out_f)

    assert p_out.shape == (B, N, 3)
    assert center_p.shape == (B, M, 3)
    assert out_f.shape == (B, EMBED, M)
    assert bool(jnp.all(jnp.isfinite(out_f)))
    print("KERNEL_OK")
</pallas_src>

<mosaic_0001>
module attributes {stable_mosaic.version = 11 : i64} {
  func.func @_embed_kernel(%arg0: i32, %arg1: memref<256x6xbf16, #tpu.memory_space<vmem>>, %arg2: memref<6x32xbf16, #tpu.memory_space<vmem>>, %arg3: memref<32x32xbf16, #tpu.memory_space<vmem>>, %arg4: memref<64x64xbf16, #tpu.memory_space<vmem>>, %arg5: memref<64x32xbf16, #tpu.memory_space<vmem>>, %arg6: memref<6x64xf32, #tpu.memory_space<vmem>>, %arg7: memref<32x32xf32, #tpu.memory_space<vmem>>) attributes {dimension_semantics = [#tpu.dimension_semantics<arbitrary>], iteration_bounds = array<i64: 1>, scalar_prefetch = 0 : i64, scratch_operands = 0 : i64, tpu.core_type = #tpu.core_type<tc>, window_params = [{pipeline_mode = #tpu.pipeline_mode<synchronous>, transform_indices = @transform_0, window_bounds = array<i64: 256, 6>}, {pipeline_mode = #tpu.pipeline_mode<synchronous>, transform_indices = @transform_1, window_bounds = array<i64: 6, 32>}, {pipeline_mode = #tpu.pipeline_mode<synchronous>, transform_indices = @transform_2, window_bounds = array<i64: 32, 32>}, {pipeline_mode = #tpu.pipeline_mode<synchronous>, transform_indices = @transform_3, window_bounds = array<i64: 64, 64>}, {pipeline_mode = #tpu.pipeline_mode<synchronous>, transform_indices = @transform_4, window_bounds = array<i64: 64, 32>}, {pipeline_mode = #tpu.pipeline_mode<synchronous>, transform_indices = @transform_5, window_bounds = array<i64: 6, 64>}, {pipeline_mode = #tpu.pipeline_mode<synchronous>, transform_indices = @transform_6, window_bounds = array<i64: 32, 32>}]} {
    %c0 = arith.constant 0 : index
    %c0_0 = arith.constant 0 : index
    %0 = vector.load %arg6[%c0, %c0_0] : memref<6x64xf32, #tpu.memory_space<vmem>>, vector<6x64xf32>
    %1 = vector.extract_strided_slice %0 {offsets = [0, 0], sizes = [1, 32], strides = [1, 1]} : vector<6x64xf32> to vector<1x32xf32>
    %2 = vector.extract_strided_slice %0 {offsets = [1, 0], sizes = [1, 32], strides = [1, 1]} : vector<6x64xf32> to vector<1x32xf32>
    %3 = vector.extract_strided_slice %0 {offsets = [2, 0], sizes = [1, 32], strides = [1, 1]} : vector<6x64xf32> to vector<1x32xf32>
    %4 = vector.extract_strided_slice %0 {offsets = [3, 0], sizes = [1, 64], strides = [1, 1]} : vector<6x64xf32> to vector<1x64xf32>
    %5 = vector.extract_strided_slice %0 {offsets = [4, 0], sizes = [1, 64], strides = [1, 1]} : vector<6x64xf32> to vector<1x64xf32>
    %6 = vector.extract_strided_slice %0 {offsets = [5, 0], sizes = [1, 32], strides = [1, 1]} : vector<6x64xf32> to vector<1x32xf32>
    %c0_1 = arith.constant 0 : index
    %c0_2 = arith.constant 0 : index
    %7 = vector.load %arg1[%c0_1, %c0_2] : memref<256x6xbf16, #tpu.memory_space<vmem>>, vector<256x6xbf16>
    %c0_3 = arith.constant 0 : index
    %c0_4 = arith.constant 0 : index
    %8 = vector.load %arg2[%c0_3, %c0_4] : memref<6x32xbf16, #tpu.memory_space<vmem>>, vector<6x32xbf16>
    %cst = arith.constant dense<0.000000e+00> : vector<256x32xf32>
    %9 = tpu.matmul %7, %8, %cst {dimension_numbers = #tpu.dot_dimension_numbers<[1], [0], [0], [1], [0, 0, 1, 1], [], []>} : vector<256x6xbf16>, vector<6x32xbf16>, vector<256x32xf32> -> vector<256x32xf32>
    %cst_5 = arith.constant dense<0.000000e+00> : vector<32xf32>
    %10 = vector.multi_reduction <add>, %9, %cst_5 [0] : vector<256x32xf32> to vector<32xf32>
    %11 = vector.shape_cast %10 : vector<32xf32> to vector<1x32xf32>
    %cst_6 = arith.constant 3.906250e-03 : f32
    %12 = vector.broadcast %cst_6 : f32 to vector<1x32xf32>
    %13 = arith.mulf %11, %12 : vector<1x32xf32>
    %14 = vector.broadcast %13 : vector<1x32xf32> to vector<256x32xf32>
    %15 = arith.subf %9, %14 : vector<256x32xf32>
    %16 = arith.mulf %15, %15 : vector<256x32xf32>
    %cst_7 = arith.constant dense<0.000000e+00> : vector<32xf32>
    %17 = vector.multi_reduction <add>, %16, %cst_7 [0] : vector<256x32xf32> to vector<32xf32>
    %18 = vector.shape_cast %17 : vector<32xf32> to vector<1x32xf32>
    %cst_8 = arith.constant 3.906250e-03 : f32
    %19 = vector.broadcast %cst_8 : f32 to vector<1x32xf32>
    %20 = arith.mulf %18, %19 : vector<1x32xf32>
    %cst_9 = arith.constant 9.99999974E-6 : f32
    %21 = vector.broadcast %cst_9 : f32 to vector<1x32xf32>
    %22 = arith.addf %20, %21 : vector<1x32xf32>
    %23 = math.rsqrt %22 : vector<1x32xf32>
    %24 = arith.mulf %23, %1 : vector<1x32xf32>
    %25 = vector.broadcast %24 : vector<1x32xf32> to vector<256x32xf32>
    %26 = arith.mulf %15, %25 : vector<256x32xf32>
    %27 = vector.broadcast %2 : vector<1x32xf32> to vector<256x32xf32>
    %28 = arith.addf %26, %27 : vector<256x32xf32>
    %cst_10 = arith.constant 0.000000e+00 : f32
    %29 = vector.broadcast %cst_10 : f32 to vector<256x32xf32>
    %30 = arith.maximumf %28, %29 : vector<256x32xf32>
    %31 = arith.truncf %30 : vector<256x32xf32> to vector<256x32xbf16>
    %c0_11 = arith.constant 0 : index
    %c0_12 = arith.constant 0 : index
    %32 = vector.load %arg3[%c0_11, %c0_12] : memref<32x32xbf16, #tpu.memory_space<vmem>>, vector<32x32xbf16>
    %cst_13 = arith.constant dense<0.000000e+00> : vector<256x32xf32>
    %33 = tpu.matmul %31, %32, %cst_13 {dimension_numbers = #tpu.dot_dimension_numbers<[1], [0], [0], [1], [0, 0, 1, 1], [], []>} : vector<256x32xbf16>, vector<32x32xbf16>, vector<256x32xf32> -> vector<256x32xf32>
    %34 = vector.broadcast %3 : vector<1x32xf32> to vector<256x32xf32>
    %35 = arith.addf %33, %34 : vector<256x32xf32>
    %36 = vector.shape_cast %35 : vector<256x32xf32> to vector<8x32x32xf32>
    %cst_14 = arith.constant dense<0xFF800000> : vector<32x32xf32>
    %37 = vector.multi_reduction <maximumf>, %36, %cst_14 [0] : vector<8x32x32xf32> to vector<32x32xf32>
    %38 = arith.truncf %35 : vector<256x32xf32> to vector<256x32xbf16>
    %c32 = arith.constant 32 : index
    %c0_15 = arith.constant 0 : index
    %39 = vector.load %arg4[%c32, %c0_15] : memref<64x64xbf16, #tpu.memory_space<vmem>>, vector<32x64xbf16>
    %cst_16 = arith.constant dense<0.000000e+00> : vector<256x64xf32>
    %40 = tpu.matmul %38, %39, %cst_16 {dimension_numbers = #tpu.dot_dimension_numbers<[1], [0], [0], [1], [0, 0, 1, 1], [], []>} : vector<256x32xbf16>, vector<32x64xbf16>, vector<256x64xf32> -> vector<256x64xf32>
    %41 = arith.truncf %37 : vector<32x32xf32> to vector<32x32xbf16>
    %c0_17 = arith.constant 0 : index
    %c0_18 = arith.constant 0 : index
    %42 = vector.load %arg4[%c0_17, %c0_18] : memref<64x64xbf16, #tpu.memory_space<vmem>>, vector<32x64xbf16>
    %cst_19 = arith.constant dense<0.000000e+00> : vector<32x64xf32>
    %43 = tpu.matmul %41, %42, %cst_19 {dimension_numbers = #tpu.dot_dimension_numbers<[1], [0], [0], [1], [0, 0, 1, 1], [], []>} : vector<32x32xbf16>, vector<32x64xbf16>, vector<32x64xf32> -> vector<32x64xf32>
    %44 = vector.shape_cast %40 : vector<256x64xf32> to vector<8x32x64xf32>
    %45 = vector.shape_cast %43 : vector<32x64xf32> to vector<1x32x64xf32>
    %46 = vector.broadcast %45 : vector<1x32x64xf32> to vector<8x32x64xf32>
    %47 = arith.addf %44, %46 : vector<8x32x64xf32>
    %48 = vector.shape_cast %47 : vector<8x32x64xf32> to vector<256x64xf32>
    %cst_20 = arith.constant dense<0.000000e+00> : vector<64xf32>
    %49 = vector.multi_reduction <add>, %48, %cst_20 [0] : vector<256x64xf32> to vector<64xf32>
    %50 = vector.shape_cast %49 : vector<64xf32> to vector<1x64xf32>
    %cst_21 = arith.constant 3.906250e-03 : f32
    %51 = vector.broadcast %cst_21 : f32 to vector<1x64xf32>
    %52 = arith.mulf %50, %51 : vector<1x64xf32>
    %53 = vector.broadcast %52 : vector<1x64xf32> to vector<256x64xf32>
    %54 = arith.subf %48, %53 : vector<256x64xf32>
    %55 = arith.mulf %54, %54 : vector<256x64xf32>
    %cst_22 = arith.constant dense<0.000000e+00> : vector<64xf32>
    %56 = vector.multi_reduction <add>, %55, %cst_22 [0] : vector<256x64xf32> to vector<64xf32>
    %57 = vector.shape_cast %56 : vector<64xf32> to vector<1x64xf32>
    %cst_23 = arith.constant 3.906250e-03 : f32
    %58 = vector.broadcast %cst_23 : f32 to vector<1x64xf32>
    %59 = arith.mulf %57, %58 : vector<1x64xf32>
    %cst_24 = arith.constant 9.99999974E-6 : f32
    %60 = vector.broadcast %cst_24 : f32 to vector<1x64xf32>
    %61 = arith.addf %59, %60 : vector<1x64xf32>
    %62 = math.rsqrt %61 : vector<1x64xf32>
    %63 = arith.mulf %62, %4 : vector<1x64xf32>
    %64 = vector.broadcast %63 : vector<1x64xf32> to vector<256x64xf32>
    %65 = arith.mulf %54, %64 : vector<256x64xf32>
    %66 = vector.broadcast %5 : vector<1x64xf32> to vector<256x64xf32>
    %67 = arith.addf %65, %66 : vector<256x64xf32>
    %cst_25 = arith.constant 0.000000e+00 : f32
    %68 = vector.broadcast %cst_25 : f32 to vector<256x64xf32>
    %69 = arith.maximumf %67, %68 : vector<256x64xf32>
    %70 = arith.truncf %69 : vector<256x64xf32> to vector<256x64xbf16>
    %c0_26 = arith.constant 0 : index
    %c0_27 = arith.constant 0 : index
    %71 = vector.load %arg5[%c0_26, %c0_27] : memref<64x32xbf16, #tpu.memory_space<vmem>>, vector<64x32xbf16>
    %cst_28 = arith.constant dense<0.000000e+00> : vector<256x32xf32>
    %72 = tpu.matmul %70, %71, %cst_28 {dimension_numbers = #tpu.dot_dimension_numbers<[1], [0], [0], [1], [0, 0, 1, 1], [], []>} : vector<256x64xbf16>, vector<64x32xbf16>, vector<256x32xf32> -> vector<256x32xf32>
    %73 = vector.broadcast %6 : vector<1x32xf32> to vector<256x32xf32>
    %74 = arith.addf %72, %73 : vector<256x32xf32>
    %75 = vector.shape_cast %74 : vector<256x32xf32> to vector<8x32x32xf32>
    %cst_29 = arith.constant dense<0xFF800000> : vector<32x32xf32>
    %76 = vector.multi_reduction <maximumf>, %75, %cst_29 [0] : vector<8x32x32xf32> to vector<32x32xf32>
    %c0_30 = arith.constant 0 : index
    %c0_31 = arith.constant 0 : index
    %77 = vector.load %arg7[%c0_30, %c0_31] : memref<32x32xf32, #tpu.memory_space<vmem>>, vector<32x32xf32>
    tpu.vector_store %arg7[%c0_30, %c0_31], %76 {strides = array<i32>} : memref<32x32xf32, #tpu.memory_space<vmem>>, vector<32x32xf32>,
    return
  }
  func.func @transform_0(%arg0: i32) -> (i32, i32) {
    %c0_i32 = arith.constant 0 : i32
    %c0_i32_0 = arith.constant 0 : i32
    %c0_i32_1 = arith.constant 0 : i32
    return %c0_i32, %c0_i32_0 : i32, i32
  }
  func.func @transform_1(%arg0: i32) -> (i32, i32) {
    %c0_i32 = arith.constant 0 : i32
    %c0_i32_0 = arith.constant 0 : i32
    %c0_i32_1 = arith.constant 0 : i32
    return %c0_i32, %c0_i32_0 : i32, i32
  }
  func.func @transform_2(%arg0: i32) -> (i32, i32) {
    %c0_i32 = arith.constant 0 : i32
    %c0_i32_0 = arith.constant 0 : i32
    %c0_i32_1 = arith.constant 0 : i32
    return %c0_i32, %c0_i32_0 : i32, i32
  }
  func.func @transform_3(%arg0: i32) -> (i32, i32) {
    %c0_i32 = arith.constant 0 : i32
    %c0_i32_0 = arith.constant 0 : i32
    %c0_i32_1 = arith.constant 0 : i32
    return %c0_i32, %c0_i32_0 : i32, i32
  }
  func.func @transform_4(%arg0: i32) -> (i32, i32) {
    %c0_i32 = arith.constant 0 : i32
    %c0_i32_0 = arith.constant 0 : i32
    %c0_i32_1 = arith.constant 0 : i32
    return %c0_i32, %c0_i32_0 : i32, i32
  }
  func.func @transform_5(%arg0: i32) -> (i32, i32) {
    %c0_i32 = arith.constant 0 : i32
    %c0_i32_0 = arith.constant 0 : i32
    %c0_i32_1 = arith.constant 0 : i32
    return %c0_i32, %c0_i32_0 : i32, i32
  }
  func.func @transform_6(%arg0: i32) -> (i32, i32) {
    %c0_i32 = arith.constant 0 : i32
    %c0_i32_0 = arith.constant 0 : i32
    %c0_i32_1 = arith.constant 0 : i32
    return %c0_i32, %c0_i32_0 : i32, i32
  }
}

</mosaic_0001>

<bundles_post_ra>
// kernel: custom-call.6
= control target key start
LH: loop header
LB: loop body
LE: loop exit
PB: predicated region body
PF: predicated region fallthrough
CT: control target
= control target key end

     0   :  { %s6_s0 = inlined_call_operand.vmem [shape: f32[2,64], index: 0, kind: output, shape index: {}]  }

// kernel: point_patch_embed.1
= control target key start
LH: loop header
LB: loop body
LE: loop exit
PB: predicated region body
PF: predicated region fallthrough
CT: control target
= control target key end

     0   :  { %vm188_vm0 = vcmask 1042432   ;;  %vm139_vm1 = vcmask 48128   ;;  %s3744_s0 = inlined_call_operand.vmem [shape: bf16[256,6], index: 0, kind: input, shape index: {}]   ;;  %s3745_s1 = inlined_call_operand.vmem [shape: bf16[6,32], index: 1, kind: input, shape index: {}]   ;;  %s3746_s2 = inlined_call_operand.vmem [shape: bf16[32,32], index: 2, kind: input, shape index: {}]   ;;  %s3747_s3 = inlined_call_operand.vmem [shape: bf16[64,64], index: 3, kind: input, shape index: {}]   ;;  %s3748_s4 = inlined_call_operand.vmem [shape: bf16[64,32], index: 4, kind: input, shape index: {}]   ;;  %s3749_s5 = inlined_call_operand.vmem [shape: f32[6,64], index: 5, kind: input, shape index: {}]   ;;  %s3750_s6 = inlined_call_operand.hbm [shape: f32[32,32], index: 6, kind: output, shape index: {}]  }
   0x1   :  { %v58_v0 = vld [vmem:[%s3745_s1] sm:$0x7]  ;;  %v2297_v3 = vld [vmem:[%s3744_s0 + $0x8] sm:$0xff]   ;;  %v2298_v4 = vld [vmem:[%s3744_s0 + $0x10] sm:$0xff]  }
   0x2   :  { %v2296_v1 = vld [vmem:[%s3744_s0] sm:$0xff]   ;;  %2292 = vmatprep.subr.msk.bf16.mxu0 %vm188_vm0, %v58_v0  ;;  %v190_v2 = vsel %vm188_vm0, %v58_v0, 0  ;;  %v2299_v5 = vld [vmem:[%s3744_s0 + $0x18] sm:$0xff]   ;;  %v2301_v7 = vld [vmem:[%s3744_s0 + $0x28] sm:$0xff]  }
   0x3   :  { %2139 = vmatpush3.bf16.msra.mxu0 %v190_v2  ;;  %2140 = vmatprep.mubr.msk.bf16.mxu0 %vm139_vm1, %v2296_v1  ;;  %v2300_v6 = vld [vmem:[%s3744_s0 + $0x20] sm:$0xff]   ;;  %v2302_v8 = vld [vmem:[%s3744_s0 + $0x30] sm:$0xff]  }
   0x6   :  { %2141 = vmatmul.mubr.msk.bf16.vlgmr.msra.gmra.mxu0 %vm139_vm1, %v2297_v3 }
   0x7   :  { %2144 = vmatprep.mubr.msk.bf16.mxu0 %vm139_vm1, %v2298_v4 }
   0xe   :  { %2145 = vmatmul.mubr.msk.bf16.gmra.mxu0 %vm139_vm1, %v2299_v5 }
   0xf   :  { %2148 = vmatprep.mubr.msk.bf16.mxu0 %vm139_vm1, %v2300_v6 }
  0x16   :  { %2149 = vmatmul.mubr.msk.bf16.gmra.mxu0 %vm139_vm1, %v2301_v7 }
  0x17   :  { %2152 = vmatprep.mubr.msk.bf16.mxu0 %vm139_vm1, %v2302_v8 }
  0x18   :  { %11 = vsyncpa [#allocation3], 0  ;;  %v2303_v9 = vld [vmem:[%s3744_s0 + $0x38] sm:$0xff]   ;;  %v2304_v10 = vld [vmem:[%s3744_s0 + $0x40] sm:$0xff]   ;;  %vm353_vm2 = vcmask 261120   ;;  %vm1316_vm3 = vcmask 523264  }
  0x19   :  { %v2305_v11 = vld [vmem:[%s3744_s0 + $0x48] sm:$0xff]   ;;  %v2306_v12 = vld [vmem:[%s3744_s0 + $0x50] sm:$0xff]   ;;  %v2307_v13 = vld [vmem:[%s3744_s0 + $0x58] sm:$0xff]  }
  0x1a   :  { %v2308_v14 = vld [vmem:[%s3744_s0 + $0x60] sm:$0xff]   ;;  %v2309_v15 = vld [vmem:[%s3744_s0 + $0x68] sm:$0xff]   ;;  %v2310_v16 = vld [vmem:[%s3744_s0 + $0x70] sm:$0xff]  }
  0x1b   :  { %v2311_v17 = vld [vmem:[%s3744_s0 + $0x78] sm:$0xff]  }
  0x1e   :  { %2153 = vmatmul.mubr.msk.bf16.gmra.mxu0 %vm139_vm1, %v2303_v9 }
  0x1f   :  { %2156 = vmatprep.mubr.msk.bf16.mxu0 %vm139_vm1, %v2304_v10 }
  0x26   :  { %2157 = vmatmul.mubr.msk.bf16.gmra.mxu0 %vm139_vm1, %v2305_v11 }
  0x27   :  { %2160 = vmatprep.mubr.msk.bf16.mxu0 %vm139_vm1, %v2306_v12 }
  0x2e   :  { %2161 = vmatmul.mubr.msk.bf16.gmra.mxu0 %vm139_vm1, %v2307_v13 }
  0x2f   :  { %2164 = vmatprep.mubr.msk.bf16.mxu0 %vm139_vm1, %v2308_v14 }
  0x36   :  { %2165 = vmatmul.mubr.msk.bf16.gmra.mxu0 %vm139_vm1, %v2309_v15 }
  0x37   :  { %2168 = vmatprep.mubr.msk.bf16.mxu0 %vm139_vm1, %v2310_v16 }
  0x3e   :  { %2169 = vmatmul.mubr.msk.bf16.gmra.mxu0 %vm139_vm1, %v2311_v17 }
  0xc6   :  { %v2454_v18 = vpop.f32.mrf.mxu0 }
  0xc7   :  { %v357_v26 = vsel %vm353_vm2, %v2454_v18, 0.0 }
  0xc8   :  { %v2456_v19 = vpop.f32.mrf.mxu0 }
  0xc9   :  { %v354_v22 = vsel %vm353_vm2, %v2456_v19, 0.0 }
  0xca   :  { %v2458_v20 = vpop.f32.mrf.mxu0 }
  0xcb   :  { %v359_v29 = vsel %vm353_vm2, %v2458_v20, 0.0 }
  0xcc   :  { %v2460_v21 = vpop.f32.mrf.mxu0 }
  0xcd   :  { %v355_v23 = vsel %vm353_vm2, %v2460_v21, 0.0 }
  0xce   :  { %v356_v24 = vadd.f32 %v355_v23, %v354_v22  ;;  %v2466_v25 = vpop.f32.mrf.mxu0 }
  0xcf   :  { %v365_v38 = vsel %vm353_vm2, %v2466_v25, 0.0 }
  0xd0   :  { %v358_v27 = vadd.f32 %v357_v26, %v356_v24  ;;  %v2470_v28 = vpop.f32.mrf.mxu0 }
  0xd1   :  { %v361_v32 = vsel %vm353_vm2, %v2470_v28, 0.0 }
  0xd2   :  { %v360_v30 = vadd.f32 %v359_v29, %v358_v27  ;;  %v2474_v31 = vpop.f32.mrf.mxu0 }
  0xd3   :  { %v367_v41 = vsel %vm353_vm2, %v2474_v31, 0.0 }
  0xd4   :  { %v362_v33 = vadd.f32 %v361_v32, %v360_v30  ;;  %v2478_v34 = vpop.f32.mrf.mxu0 }
  0xd5   :  { %v363_v35 = vsel %vm353_vm2, %v2478_v34, 0.0 }
  0xd6   :  { %v364_v36 = vadd.f32 %v363_v35, %v362_v33  ;;  %v2482_v37 = vpop.f32.mrf.mxu0 }
  0xd7   :  { %v373_v50 = vsel %vm353_vm2, %v2482_v37, 0.0 }
  0xd8   :  { %v366_v39 = vadd.f32 %v365_v38, %v364_v36  ;;  %v2486_v40 = vpop.f32.mrf.mxu0 }
  0xd9   :  { %v369_v44 = vsel %vm353_vm2, %v2486_v40, 0.0 }
  0xda   :  { %v368_v42 = vadd.f32 %v367_v41, %v366_v39  ;;  %v2490_v43 = vpop.f32.mrf.mxu0 }
  0xdb   :  { %v375_v53 = vsel %vm353_vm2, %v2490_v43, 0.0 }
  0xdc   :  { %v370_v45 = vadd.f32 %v369_v44, %v368_v42  ;;  %v2494_v46 = vpop.f32.mrf.mxu0 }
  0xdd   :  { %v371_v47 = vsel %vm353_vm2, %v2494_v46, 0.0 }
  0xde   :  { %v372_v48 = vadd.f32 %v371_v47, %v370_v45  ;;  %v2498_v49 = vpop.f32.mrf.mxu0 }
  0xdf   :  { %v381_v62 = vsel %vm353_vm2, %v2498_v49, 0.0 }
  0xe0   :  { %v374_v51 = vadd.f32 %v373_v50, %v372_v48  ;;  %v2502_v52 = vpop.f32.mrf.mxu0 }
  0xe1   :  { %v377_v56 = vsel %vm353_vm2, %v2502_v52, 0.0 }
  0xe2   :  { %v376_v54 = vadd.f32 %v375_v53, %v374_v51  ;;  %v2506_v55 = vpop.f32.mrf.mxu0 }
  0xe3   :  { %v383_v1 = vsel %vm353_vm2, %v2506_v55, 0.0 }
  0xe4   :  { %v378_v57 = vadd.f32 %v377_v56, %v376_v54  ;;  %v2510_v58 = vpop.f32.mrf.mxu0 }
  0xe5   :  { %v379_v59 = vsel %vm353_vm2, %v2510_v58, 0.0 }
  0xe6   :  { %v380_v60 = vadd.f32 %v379_v59, %v378_v57  ;;  %v2514_v61 = vpop.f32.mrf.mxu0 }
  0xe7   :  { %v389_v10 = vsel %vm353_vm2, %v2514_v61, 0.0 }
  0xe8   :  { %v382_v63 = vadd.f32 %v381_v62, %v380_v60  ;;  %v2518_v0 = vpop.f32.mrf.mxu0 }
  0xe9   :  { %v385_v4 = vsel %vm353_vm2, %v2518_v0, 0.0 }
  0xea   :  { %v384_v2 = vadd.f32 %v383_v1, %v382_v63  ;;  %v2522_v3 = vpop.f32.mrf.mxu0 }
  0xeb   :  { %v391_v13 = vsel %vm353_vm2, %v2522_v3, 0.0 }
  0xec   :  { %v386_v5 = vadd.f32 %v385_v4, %v384_v2  ;;  %v2526_v6 = vpop.f32.mrf.mxu0 }
  0xed   :  { %v387_v7 = vsel %vm353_vm2, %v2526_v6, 0.0 }
  0xee   :  { %v388_v8 = vadd.f32 %v387_v7, %v386_v5  ;;  %v2530_v9 = vpop.f32.mrf.mxu0 }
  0xef   :  { %v397_v27 = vsel %vm353_vm2, %v2530_v9, 0.0 }
  0xf0   :  { %v390_v11 = vadd.f32 %v389_v10, %v388_v8  ;;  %v2534_v12 = vpop.f32.mrf.mxu0 }
  0xf1   :  { %v393_v16 = vsel %vm353_vm2, %v2534_v12, 0.0 }
  0xf2   :  { %v392_v14 = vadd.f32 %v391_v13, %v390_v11  ;;  %v2538_v15 = vpop.f32.mrf.mxu0  ;;  %v2312_v13 = vld [vmem:[%s3746_s2 + $0x8] sm:$0xff]  }
  0xf3   :  { %v399_v32 = vsel %vm353_vm2, %v2538_v15, 0.0  ;;  %2172 = vmatprep.subr.bf16.mxu1 %v2312_v13 }
  0xf4   :  { %v394_v17 = vadd.f32 %v393_v16, %v392_v14  ;;  %v2542_v22 = vpop.f32.mrf.mxu0  ;;  %2173 = vmatpush3.bf16.msra.mxu1 %v2312_v13  ;;  %v2313_v16 = vld [vmem:[%s3746_s2] sm:$0xff]  }
  0xf5   :  { %v395_v23 = vsel %vm353_vm2, %v2542_v22, 0.0  ;;  %2174 = vmatprep.subr.bf16.mxu1 %v2313_v16 }
  0xf6   :  { %v396_v24 = vadd.f32 %v395_v23, %v394_v17  ;;  %v2546_v26 = vpop.f32.mrf.mxu0 }
  0xf7   :  { %v405_v45 = vsel %vm353_vm2, %v2546_v26, 0.0 }
  0xf8   :  { %v398_v29 = vadd.f32 %v397_v27, %v396_v24  ;;  %v2550_v30 = vpop.f32.mrf.mxu0  ;;  %2175 = vmatpush3.bf16.msra.mxu1 %v2313_v16 }
  0xf9   :  { %v401_v36 = vsel %vm353_vm2, %v2550_v30, 0.0 }
  0xfa   :  { %v400_v33 = vadd.f32 %v399_v32, %v398_v29  ;;  %v2554_v35 = vpop.f32.mrf.mxu0 }
  0xfb   :  { %v407_v50 = vsel %vm353_vm2, %v2554_v35, 0.0 }
  0xfc   :  { %v402_v38 = vadd.f32 %v401_v36, %v400_v33  ;;  %v2558_v39 = vpop.f32.mrf.mxu0 }
  0xfd   :  { %v403_v41 = vsel %vm353_vm2, %v2558_v39, 0.0 }
  0xfe   :  { %v404_v42 = vadd.f32 %v403_v41, %v402_v38  ;;  %v2562_v44 = vpop.f32.mrf.mxu0 }
  0xff   :  { %v413_v62 = vsel %vm353_vm2, %v2562_v44, 0.0 }
 0x100   :  { %v406_v47 = vadd.f32 %v405_v45, %v404_v42  ;;  %v2566_v48 = vpop.f32.mrf.mxu0 }
 0x101   :  { %v409_v54 = vsel %vm353_vm2, %v2566_v48, 0.0 }
 0x102   :  { %v408_v51 = vadd.f32 %v407_v50, %v406_v47  ;;  %v2570_v53 = vpop.f32.mrf.mxu0 }
 0x103   :  { %v415_v1 = vsel %vm353_vm2, %v2570_v53, 0.0 }
 0x104   :  { %v410_v56 = vadd.f32 %v409_v54, %v408_v51  ;;  %v2574_v57 = vpop.f32.mrf.mxu0 }
 0x105   :  { %v411_v59 = vsel %vm353_vm2, %v2574_v57, 0.0 }
 0x106   :  { %v412_v60 = vadd.f32 %v411_v59, %v410_v56 }
 0x108   :  { %v414_v63 = vadd.f32 %v413_v62, %v412_v60 }
 0x10a   :  { %v416_v2 = vadd.f32 %v415_v1, %v414_v63 }
 0x10c   :  { %v417_v4 = vrot.slane %v416_v2, 4 }
 0x10e   :  { %v418_v5 = vadd.f32 %v417_v4, %v416_v2 }
 0x110   :  { %v419_v7 = vrot.slane %v418_v5, 2 }
 0x112   :  { %v420_v8 = vadd.f32 %v419_v7, %v418_v5 }
 0x114   :  { %v421_v10 = vrot.slane %v420_v8, 1 }
 0x116   :  { %v422_v11 = vadd.f32 %v421_v10, %v420_v8 }
 0x118   :  { %v2585_v14 = vmul.f32 0.00390625, %v422_v11 }
 0x11a   :  { %v2592_v17 = vsub.f32 %v2456_v19, %v2585_v14  ;;  %v2596_v23 = vsub.f32 %v2460_v21, %v2585_v14  ;;  %v2600_v24 = vsub.f32 %v2454_v18, %v2585_v14  ;;  %v2604_v27 = vsub.f32 %v2458_v20, %v2585_v14 }
 0x11b   :  { %v2612_v21 = vsub.f32 %v2470_v28, %v2585_v14  ;;  %v2618_v18 = vsub.f32 %v2478_v34, %v2585_v14  ;;  %v2626_v41 = vsub.f32 %v2466_v25, %v2585_v14  ;;  %v2633_v34 = vsub.f32 %v2474_v31, %v2585_v14 }
 0x11c   :  { %v456_v29 = vmul.f32 %v2592_v17, %v2592_v17  ;;  %v457_v19 = vmul.f32 %v2596_v23, %v2596_v23  ;;  %v458_v32 = vmul.f32 %v2600_v24, %v2600_v24  ;;  %v459_v20 = vmul.f32 %v2604_v27, %v2604_v27 }
 0x11d   :  { %v460_v28 = vmul.f32 %v2612_v21, %v2612_v21  ;;  %v461_v47 = vmul.f32 %v2618_v18, %v2618_v18  ;;  %v2640_v25 = vsub.f32 %v2486_v40, %v2585_v14  ;;  %v462_v54 = vmul.f32 %v2626_v41, %v2626_v41 }
 0x11e   :  { %v488_v33 = vsel %vm353_vm2, %v456_v29, 0.0  ;;  %v489_v36 = vsel %vm353_vm2, %v457_v19, 0.0  ;;  %v491_v42 = vsel %vm353_vm2, %v458_v32, 0.0  ;;  %v493_v50 = vsel %vm353_vm2, %v459_v20, 0.0 }
 0x11f   :  { %v490_v38 = vadd.f32 %v489_v36, %v488_v33  ;;  %v495_v56 = vsel %vm353_vm2, %v460_v28, 0.0  ;;  %v2647_v31 = vsub.f32 %v2494_v46, %v2585_v14  ;;  %v463_v60 = vmul.f32 %v2633_v34, %v2633_v34 }
 0x120   :  { %v497_v62 = vsel %vm353_vm2, %v461_v47, 0.0  ;;  %v2654_v40 = vsub.f32 %v2482_v37, %v2585_v14  ;;  %v464_v1 = vmul.f32 %v2640_v25, %v2640_v25  ;;  %v499_v2 = vsel %vm353_vm2, %v462_v54, 0.0 }
 0x121   :  { %v492_v45 = vadd.f32 %v491_v42, %v490_v38  ;;  %v2661_v46 = vsub.f32 %v2490_v43, %v2585_v14  ;;  %v465_v5 = vmul.f32 %v2647_v31, %v2647_v31  ;;  %v501_v7 = vsel %vm353_vm2, %v463_v60, 0.0 }
 0x122   :  { %v2668_v37 = vsub.f32 %v2502_v52, %v2585_v14  ;;  %v466_v10 = vmul.f32 %v2654_v40, %v2654_v40  ;;  %v503_v11 = vsel %vm353_vm2, %v464_v1, 0.0  ;;  %v2675_v43 = vsub.f32 %v2510_v58, %v2585_v14 }
 0x123   :  { %v494_v51 = vadd.f32 %v493_v50, %v492_v45  ;;  %v467_v16 = vmul.f32 %v2661_v46, %v2661_v46  ;;  %v505_v29 = vsel %vm353_vm2, %v465_v5, 0.0  ;;  %v2682_v52 = vsub.f32 %v2498_v49, %v2585_v14 }
 0x124   :  { %v468_v32 = vmul.f32 %v2668_v37, %v2668_v37  ;;  %v507_v20 = vsel %vm353_vm2, %v466_v10, 0.0  ;;  %v2689_v58 = vsub.f32 %v2506_v55, %v2585_v14  ;;  %v469_v36 = vmul.f32 %v2675_v43, %v2675_v43 }
 0x125   :  { %v496_v59 = vadd.f32 %v495_v56, %v494_v51  ;;  %v509_v38 = vsel %vm353_vm2, %v467_v16, 0.0  ;;  %v2696_v49 = vsub.f32 %v2518_v0, %v2585_v14  ;;  %v470_v42 = vmul.f32 %v2682_v52, %v2682_v52 }
 0x126   :  { %v511_v45 = vsel %vm353_vm2, %v468_v32, 0.0  ;;  %v2703_v55 = vsub.f32 %v2526_v6, %v2585_v14  ;;  %v471_v50 = vmul.f32 %v2689_v58, %v2689_v58  ;;  %v513_v51 = vsel %vm353_vm2, %v469_v36, 0.0 }
 0x127   :  { %v498_v63 = vadd.f32 %v497_v62, %v496_v59  ;;  %v2710_v0 = vsub.f32 %v2514_v61, %v2585_v14  ;;  %v472_v56 = vmul.f32 %v2696_v49, %v2696_v49  ;;  %v515_v59 = vsel %vm353_vm2, %v470_v42, 0.0 }
 0x128   :  { %v2717_v6 = vsub.f32 %v2522_v3, %v2585_v14  ;;  %v473_v62 = vmul.f32 %v2703_v55, %v2703_v55  ;;  %v2724_v61 = vsub.f32 %v2534_v12, %v2585_v14  ;;  %v2731_v3 = vsub.f32 %v2542_v22, %v2585_v14 }
 0x129   :  { %v500_v4 = vadd.f32 %v499_v2, %v498_v63  ;;  %v517_v63 = vsel %vm353_vm2, %v471_v50, 0.0  ;;  %v474_v2 = vmul.f32 %v2710_v0, %v2710_v0  ;;  %v2738_v12 = vsub.f32 %v2530_v9, %v2585_v14 }
 0x12a   :  { %v2745_v22 = vsub.f32 %v2538_v15, %v2585_v14  ;;  %v2752_v9 = vsub.f32 %v2550_v30, %v2585_v14  ;;  %v2759_v15 = vsub.f32 %v2558_v39, %v2585_v14  ;;  %v2766_v30 = vsub.f32 %v2546_v26, %v2585_v14 }
 0x12b   :  { %v502_v8 = vadd.f32 %v501_v7, %v500_v4  ;;  %v519_v4 = vsel %vm353_vm2, %v472_v56, 0.0  ;;  %v475_v7 = vmul.f32 %v2717_v6, %v2717_v6  ;;  %v2773_v39 = vsub.f32 %v2554_v35, %v2585_v14 }
 0x12c   :  { %v2780_v26 = vsub.f32 %v2566_v48, %v2585_v14  ;;  %v2787_v35 = vsub.f32 %v2574_v57, %v2585_v14  ;;  %v2794_v48 = vsub.f32 %v2562_v44, %v2585_v14  ;;  %v2801_v57 = vsub.f32 %v2570_v53, %v2585_v14  ;;  %v2315_v53 = vld [vmem:[%s3747_s3 + $0x10] sm:$0xff]  }
 0x12d   :  { %v504_v13 = vadd.f32 %v503_v11, %v502_v8  ;;  %v521_v8 = vsel %vm353_vm2, %v473_v62, 0.0  ;;  %v476_v11 = vmul.f32 %v2724_v61, %v2724_v61 }
 0x12e   :  { %v486_v44 = vmul.f32 %v2794_v48, %v2794_v48  ;;  %v487_v14 = vmul.f32 %v2801_v57, %v2801_v57 }
 0x12f   :  { %v506_v19 = vadd.f32 %v505_v29, %v504_v13  ;;  %v523_v13 = vsel %vm353_vm2, %v474_v2, 0.0  ;;  %v477_v29 = vmul.f32 %v2731_v3, %v2731_v3 }
 0x131   :  { %v508_v33 = vadd.f32 %v507_v20, %v506_v19  ;;  %v525_v19 = vsel %vm353_vm2, %v475_v7, 0.0  ;;  %v478_v20 = vmul.f32 %v2738_v12, %v2738_v12 }
 0x133   :  { %v510_v28 = vadd.f32 %v509_v38, %v508_v33  ;;  %v527_v33 = vsel %vm353_vm2, %v476_v11, 0.0  ;;  %v479_v38 = vmul.f32 %v2745_v22, %v2745_v22 }
 0x135   :  { %v512_v47 = vadd.f32 %v511_v45, %v510_v28  ;;  %v529_v28 = vsel %vm353_vm2, %v477_v29, 0.0  ;;  %v480_v45 = vmul.f32 %v2752_v9, %v2752_v9  ;;  %v2314_v29 = vld [vmem:[%s3747_s3 + $0x18] sm:$0xff]  }
 0x136   :  { %2208 = vmatprep.subr.bf16.mxu0 %v2314_v29 }
 0x137   :  { %v514_v54 = vadd.f32 %v513_v51, %v512_v47  ;;  %v531_v47 = vsel %vm353_vm2, %v478_v20, 0.0  ;;  %v481_v51 = vmul.f32 %v2759_v15, %v2759_v15  ;;  %v547_v20 = vsel %vm353_vm2, %v486_v44, 0.0  ;;  %2209 = vmatpush3.bf16.msra.mxu0 %v2314_v29 }
 0x138   :  { %2210 = vmatprep.subr.bf16.mxu0 %v2315_v53 }
 0x139   :  { %v516_v60 = vadd.f32 %v515_v59, %v514_v54  ;;  %v533_v54 = vsel %vm353_vm2, %v479_v38, 0.0  ;;  %v482_v59 = vmul.f32 %v2766_v30, %v2766_v30 }
 0x13b   :  { %v518_v1 = vadd.f32 %v517_v63, %v516_v60  ;;  %v535_v60 = vsel %vm353_vm2, %v480_v45, 0.0  ;;  %v483_v63 = vmul.f32 %v2773_v39, %v2773_v39  ;;  %2211 = vmatpush3.bf16.msra.mxu0 %v2315_v53 }
 0x13d   :  { %v520_v5 = vadd.f32 %v519_v4, %v518_v1  ;;  %v537_v1 = vsel %vm353_vm2, %v481_v51, 0.0  ;;  %v484_v4 = vmul.f32 %v2780_v26, %v2780_v26 }
 0x13f   :  { %v522_v10 = vadd.f32 %v521_v8, %v520_v5  ;;  %v539_v5 = vsel %vm353_vm2, %v482_v59, 0.0  ;;  %v485_v8 = vmul.f32 %v2787_v35, %v2787_v35  ;;  %v561_v59 = vlaneseq }
 0x141   :  { %v524_v16 = vadd.f32 %v523_v13, %v522_v10  ;;  %v541_v10 = vsel %vm353_vm2, %v483_v63, 0.0  ;;  %v543_v13 = vsel %vm353_vm2, %v484_v4, 0.0  ;;  %v2825_v63 = vld [vmem:[%s3749_s5] sm:$0x3f] }
 0x143   :  { %v526_v32 = vadd.f32 %v525_v19, %v524_v16  ;;  %v545_v19 = vsel %vm353_vm2, %v485_v8, 0.0 }
 0x145   :  { %v528_v36 = vadd.f32 %v527_v33, %v526_v32 }
 0x147   :  { %v530_v42 = vadd.f32 %v529_v28, %v528_v36  ;;  %v549_v36 = vsel %vm353_vm2, %v487_v14, 0.0 }
 0x149   :  { %v532_v50 = vadd.f32 %v531_v47, %v530_v42 }
 0x14b   :  { %v534_v56 = vadd.f32 %v533_v54, %v532_v50 }
 0x14d   :  { %v536_v62 = vadd.f32 %v535_v60, %v534_v56  ;;  %v2820_v60 = vshrl.u32 %v561_v59, 7 }
 0x14f   :  { %v538_v2 = vadd.f32 %v537_v1, %v536_v62 }
 0x151   :  { %v540_v7 = vadd.f32 %v539_v5, %v538_v2  ;;  %v563_v2 = vsub.s32 0, %v2820_v60  ;;  %v599_v5 = vsub.s32 1, %v2820_v60 }
 0x153   :  { %v542_v11 = vadd.f32 %v541_v10, %v540_v7  ;;  %v2833_v7 = vrot.slane %v2825_v63, %v599_v5 }
 0x155   :  { %v544_v16 = vadd.f32 %v543_v13, %v542_v11 }
 0x157   :  { %v546_v32 = vadd.f32 %v545_v19, %v544_v16 }
 0x159   :  { %v548_v33 = vadd.f32 %v547_v20, %v546_v32 }
 0x15b   :  { %v550_v38 = vadd.f32 %v549_v36, %v548_v33 }
 0x15d   :  { %v551_v28 = vrot.slane %v550_v38, 4 }
 0x15f   :  { %v552_v42 = vadd.f32 %v551_v28, %v550_v38 }
 0x161   :  { %v553_v45 = vrot.slane %v552_v42, 2 }
 0x163   :  { %v554_v47 = vadd.f32 %v553_v45, %v552_v42 }
 0x165   :  { %v555_v50 = vrot.slane %v554_v47, 1 }
 0x167   :  { %v556_v51 = vadd.f32 %v555_v50, %v554_v47 }
 0x169   :  { %v557_v54 = vmul.f32 0.00390625, %v556_v51 }
 0x16b   :  { %v558_v56 = vadd.f32 1e-05, %v557_v54 }
 0x16d   :  { %2322 = vrsqrt.f32 %v558_v56 }
 0x17a   :  { %v2323_v62 = vpop.eup %2322 }
 0x17b   :  { %v560_v1 = vmul.f32 %v2323_v62, %v2825_v63 }
 0x17d   :  { %v2829_v4 = vrot.slane %v560_v1, %v563_v2 }
 0x17f   :  { %v567_v8 = vmul.f32 %v2829_v4, %v2600_v24  ;;  %v568_v10 = vmul.f32 %v2829_v4, %v2604_v27  ;;  %v569_v11 = vmul.f32 %v2829_v4, %v2612_v21  ;;  %v570_v44 = vmul.f32 %v2829_v4, %v2618_v18 }
 0x180   :  { %v565_v29 = vmul.f32 %v2829_v4, %v2592_v17  ;;  %v566_v53 = vmul.f32 %v2829_v4, %v2596_v23  ;;  %v571_v32 = vmul.f32 %v2829_v4, %v2626_v41  ;;  %v572_v20 = vmul.f32 %v2829_v4, %v2633_v34 }
 0x181   :  { %v603_v13 = vadd.f32 %v2833_v7, %v567_v8  ;;  %v604_v16 = vadd.f32 %v2833_v7, %v568_v10  ;;  %v605_v24 = vadd.f32 %v2833_v7, %v569_v11  ;;  %v606_v27 = vadd.f32 %v2833_v7, %v570_v44 }
 0x182   :  { %v601_v21 = vadd.f32 %v2833_v7, %v565_v29  ;;  %v602_v18 = vadd.f32 %v2833_v7, %v566_v53  ;;  %v573_v17 = vmul.f32 %v2829_v4, %v2640_v25  ;;  %v574_v23 = vmul.f32 %v2829_v4, %v2647_v31 }
 0x183   :  { %v635_v14 = vmax.f32 %v603_v13, 0.0  ;;  %v636_v19 = vmax.f32 %v604_v16, 0.0  ;;  %v637_v33 = vmax.f32 %v605_v24, 0.0  ;;  %v638_v36 = vmax.f32 %v606_v27, 0.0 }
 0x184   :  { %v633_v38 = vmax.f32 %v601_v21, 0.0  ;;  %v634_v28 = vmax.f32 %v602_v18, 0.0  ;;  %v607_v47 = vadd.f32 %v2833_v7, %v571_v32  ;;  %v608_v50 = vadd.f32 %v2833_v7, %v572_v20 }
 0x185   :  { %v666_v42 = vpack.c.bf16 %v636_v19, %v635_v14  ;;  %v609_v41 = vadd.f32 %v2833_v7, %v573_v17  ;;  %v610_v34 = vadd.f32 %v2833_v7, %v574_v23  ;;  %v667_v25 = vpack.c.bf16 %v638_v36, %v637_v33 }
 0x186   :  { %v665_v45 = vpack.c.bf16 %v634_v28, %v633_v38  ;;  %v575_v31 = vmul.f32 %v2829_v4, %v2654_v40  ;;  %v576_v51 = vmul.f32 %v2829_v4, %v2661_v46  ;;  %v639_v54 = vmax.f32 %v607_v47, 0.0 }
 0x187   :  { %v640_v56 = vmax.f32 %v608_v50, 0.0  ;;  %v577_v59 = vmul.f32 %v2829_v4, %v2668_v37  ;;  %v578_v62 = vmul.f32 %v2829_v4, %v2675_v43  ;;  %v641_v1 = vmax.f32 %v609_v41, 0.0 }
 0x188   :  { %2176 = vmatprep.mubr.msk.bf16.mxu1 %vm353_vm2, %v665_v45  ;;  %v642_v2 = vmax.f32 %v610_v34, 0.0  ;;  %v611_v5 = vadd.f32 %v2833_v7, %v575_v31  ;;  %v612_v8 = vadd.f32 %v2833_v7, %v576_v51  ;;  %v579_v37 = vmul.f32 %v2829_v4, %v2682_v52 }
 0x189   :  { %2177 = vmatmul.mubr.msk.bf16.vlgmr.msra.gmra.mxu1 %vm353_vm2, %v666_v42  ;;  %v668_v10 = vpack.c.bf16 %v640_v56, %v639_v54  ;;  %v613_v40 = vadd.f32 %v2833_v7, %v577_v59  ;;  %v614_v11 = vadd.f32 %v2833_v7, %v578_v62  ;;  %v580_v43 = vmul.f32 %v2829_v4, %v2689_v58 }
 0x18a   :  { %2180 = vmatprep.mubr.msk.bf16.mxu1 %vm353_vm2, %v667_v25  ;;  %v669_v46 = vpack.c.bf16 %v642_v2, %v641_v1  ;;  %v643_v44 = vmax.f32 %v611_v5, 0.0  ;;  %v644_v13 = vmax.f32 %v612_v8, 0.0  ;;  %v581_v16 = vmul.f32 %v2829_v4, %v2696_v49 }
 0x18b   :  { %v582_v29 = vmul.f32 %v2829_v4, %v2703_v55  ;;  %v645_v53 = vmax.f32 %v613_v40, 0.0  ;;  %v646_v24 = vmax.f32 %v614_v11, 0.0  ;;  %v615_v27 = vadd.f32 %v2833_v7, %v579_v37 }
 0x18c   :  { %v616_v14 = vadd.f32 %v2833_v7, %v580_v43  ;;  %v670_v19 = vpack.c.bf16 %v644_v13, %v643_v44  ;;  %v617_v52 = vadd.f32 %v2833_v7, %v581_v16  ;;  %v583_v49 = vmul.f32 %v2829_v4, %v2710_v0 }
 0x18d   :  { %v618_v21 = vadd.f32 %v2833_v7, %v582_v29  ;;  %v671_v58 = vpack.c.bf16 %v646_v24, %v645_v53  ;;  %v584_v55 = vmul.f32 %v2829_v4, %v2717_v6  ;;  %v647_v18 = vmax.f32 %v615_v27, 0.0 }
 0x18e   :  { %v648_v32 = vmax.f32 %v616_v14, 0.0  ;;  %v585_v20 = vmul.f32 %v2829_v4, %v2724_v61  ;;  %v586_v17 = vmul.f32 %v2829_v4, %v2731_v3  ;;  %v649_v23 = vmax.f32 %v617_v52, 0.0 }
 0x18f   :  { %v650_v33 = vmax.f32 %v618_v21, 0.0  ;;  %v619_v36 = vadd.f32 %v2833_v7, %v583_v49  ;;  %v620_v38 = vadd.f32 %v2833_v7, %v584_v55  ;;  %v587_v61 = vmul.f32 %v2829_v4, %v2738_v12 }
 0x190   :  { %v672_v28 = vpack.c.bf16 %v648_v32, %v647_v18  ;;  %v621_v0 = vadd.f32 %v2833_v7, %v585_v20  ;;  %v622_v42 = vadd.f32 %v2833_v7, %v586_v17  ;;  %v588_v3 = vmul.f32 %v2829_v4, %v2745_v22 }
 0x191   :  { %2181 = vmatmul.mubr.msk.bf16.gmra.mxu1 %vm353_vm2, %v668_v10  ;;  %v673_v6 = vpack.c.bf16 %v650_v33, %v649_v23  ;;  %v651_v45 = vmax.f32 %v619_v36, 0.0  ;;  %v652_v47 = vmax.f32 %v620_v38, 0.0  ;;  %v589_v50 = vmul.f32 %v2829_v4, %v2752_v9  ;;  %v2317_v33 = vld [vmem:[%s3747_s3] sm:$0xff]  }
 0x192   :  { %2184 = vmatprep.mubr.msk.bf16.mxu1 %vm353_vm2, %v669_v46  ;;  %v590_v41 = vmul.f32 %v2829_v4, %v2759_v15  ;;  %v653_v34 = vmax.f32 %v621_v0, 0.0  ;;  %v654_v25 = vmax.f32 %v622_v42, 0.0  ;;  %v623_v31 = vadd.f32 %v2833_v7, %v587_v61 }
 0x193   :  { %v624_v51 = vadd.f32 %v2833_v7, %v588_v3  ;;  %v674_v54 = vpack.c.bf16 %v652_v47, %v651_v45  ;;  %v625_v12 = vadd.f32 %v2833_v7, %v589_v50  ;;  %v591_v9 = vmul.f32 %v2829_v4, %v2766_v30 }
 0x194   :  { %v626_v56 = vadd.f32 %v2833_v7, %v590_v41  ;;  %v675_v22 = vpack.c.bf16 %v654_v25, %v653_v34  ;;  %v592_v15 = vmul.f32 %v2829_v4, %v2773_v39  ;;  %v655_v59 = vmax.f32 %v623_v31, 0.0 }
 0x195   :  { %v656_v62 = vmax.f32 %v624_v51, 0.0  ;;  %v594_v1 = vmul.f32 %v2829_v4, %v2787_v35  ;;  %v593_v2 = vmul.f32 %v2829_v4, %v2780_v26  ;;  %v657_v5 = vmax.f32 %v625_v12, 0.0 }
 0x196   :  { %v658_v8 = vmax.f32 %v626_v56, 0.0  ;;  %v627_v10 = vadd.f32 %v2833_v7, %v591_v9  ;;  %v628_v40 = vadd.f32 %v2833_v7, %v592_v15  ;;  %v595_v35 = vmul.f32 %v2829_v4, %v2794_v48 }
 0x197   :  { %v676_v11 = vpack.c.bf16 %v656_v62, %v655_v59  ;;  %v630_v30 = vadd.f32 %v2833_v7, %v594_v1  ;;  %v629_v46 = vadd.f32 %v2833_v7, %v593_v2  ;;  %v596_v26 = vmul.f32 %v2829_v4, %v2801_v57  ;;  %v2316_v57 = vld [vmem:[%s3747_s3 + $0x8] sm:$0xff]  }
 0x198   :  { %v677_v39 = vpack.c.bf16 %v658_v8, %v657_v5  ;;  %v659_v37 = vmax.f32 %v627_v10, 0.0  ;;  %v660_v43 = vmax.f32 %v628_v40, 0.0  ;;  %v631_v16 = vadd.f32 %v2833_v7, %v595_v35  ;;  %2244 = vmatprep.subr.bf16.mxu0 %v2316_v57 }
 0x199   :  { %2185 = vmatmul.mubr.msk.bf16.gmra.mxu1 %vm353_vm2, %v670_v19  ;;  %v662_v44 = vmax.f32 %v630_v30, 0.0  ;;  %v661_v13 = vmax.f32 %v629_v46, 0.0  ;;  %v632_v29 = vadd.f32 %v2833_v7, %v596_v26  ;;  %v687_v4 = vsub.s32 2, %v2820_v60 }
 0x19a   :  { %2188 = vmatprep.mubr.msk.bf16.mxu1 %vm353_vm2, %v671_v58  ;;  %v678_v53 = vpack.c.bf16 %v660_v43, %v659_v37  ;;  %v663_v27 = vmax.f32 %v631_v16, 0.0 }
 0x19b   :  { %v679_v24 = vpack.c.bf16 %v662_v44, %v661_v13  ;;  %v664_v14 = vmax.f32 %v632_v29, 0.0  ;;  %v2952_v52 = vrot.slane %v2825_v63, %v687_v4 }
 0x19d   :  { %v680_v48 = vpack.c.bf16 %v664_v14, %v663_v27 }
 0x1a1   :  { %2189 = vmatmul.mubr.msk.bf16.gmra.mxu1 %vm353_vm2, %v672_v28 }
 0x1a2   :  { %2192 = vmatprep.mubr.msk.bf16.mxu1 %vm353_vm2, %v673_v6 }
 0x1a9   :  { %2193 = vmatmul.mubr.msk.bf16.gmra.mxu1 %vm353_vm2, %v674_v54 }
 0x1aa   :  { %2196 = vmatprep.mubr.msk.bf16.mxu1 %vm353_vm2, %v675_v22 }
 0x1b1   :  { %2197 = vmatmul.mubr.msk.bf16.gmra.mxu1 %vm353_vm2, %v676_v11 }
 0x1b2   :  { %2200 = vmatprep.mubr.msk.bf16.mxu1 %vm353_vm2, %v677_v39 }
 0x1b9   :  { %2201 = vmatmul.mubr.msk.bf16.gmra.mxu1 %vm353_vm2, %v678_v53 }
 0x1ba   :  { %2204 = vmatprep.mubr.msk.bf16.mxu1 %vm353_vm2, %v679_v24 }
 0x1c1   :  { %2205 = vmatmul.mubr.msk.bf16.gmra.mxu1 %vm353_vm2, %v680_v48 }
 0x249   :  { %v2178_v19 = vpop.f32.mrf.mxu1 }
 0x24a   :  { %v2964_v32 = vadd.f32 %v2178_v19, %v2952_v52 }
 0x24b   :  { %v783_v7 = vpop.f32.mrf.mxu1 }
 0x24c   :  { %v2958_v55 = vadd.f32 %v783_v7, %v2952_v52 }
 0x24d   :  { %v2179_v21 = vpop.f32.mrf.mxu1 }
 0x24e   :  { %v2955_v58 = vadd.f32 %v2179_v21, %v2952_v52 }
 0x24f   :  { %v786_v49 = vpop.f32.mrf.mxu1 }
 0x250   :  { %v2961_v18 = vadd.f32 %v786_v49, %v2952_v52  ;;  %v971_v63 = vpack.c.bf16 %v2955_v58, %v2964_v32 }
 0x251   :  { %v2182_v20 = vpop.f32.mrf.mxu1 }
 0x252   :  { %v970_v17 = vpack.c.bf16 %v2961_v18, %v2958_v55  ;;  %v808_v6 = vadd.f32 %v2182_v20, %v2952_v52 }
 0x253   :  { %v799_v23 = vpop.f32.mrf.mxu1 }
 0x254   :  { %2212 = vmatprep.mubr.msk.bf16.mxu0 %vm353_vm2, %v970_v17  ;;  %v800_v0 = vadd.f32 %v799_v23, %v2952_v52  ;;  %v941_v4 = vsel %vm353_vm2, %v808_v6, -inf  ;;  %v940_v17 = vsel %vm353_vm2, %v2964_v32, -inf  ;;  %v955_v23 = vsel %vm353_vm2, %v2955_v58, -inf }
 0x255   :  { %v2183_v36 = vpop.f32.mrf.mxu1  ;;  %2213 = vmatmul.mubr.msk.bf16.vlgmr.msra.gmra.mxu0 %vm353_vm2, %v971_v63  ;;  %v910_v63 = vsel %vm353_vm2, %v2958_v55, -inf }
 0x256   :  { %2245 = vmatpush3.bf16.msra.mxu0 %v2316_v57  ;;  %v811_v38 = vadd.f32 %v2183_v36, %v2952_v52  ;;  %v911_v21 = vsel %vm353_vm2, %v800_v0, -inf }
 0x257   :  { %v802_v28 = vpop.f32.mrf.mxu1  ;;  %2246 = vmatprep.subr.bf16.mxu0 %v2317_v33  ;;  %v912_v32 = vmax.f32 %v910_v63, %v911_v21 }
 0x258   :  { %v803_v42 = vadd.f32 %v802_v28, %v2952_v52  ;;  %v973_v45 = vpack.c.bf16 %v811_v38, %v808_v6  ;;  %v956_v49 = vsel %vm353_vm2, %v811_v38, -inf  ;;  %v942_v38 = vmax.f32 %v940_v17, %v941_v4 }
 0x259   :  { %v2186_v61 = vpop.f32.mrf.mxu1  ;;  %v957_v6 = vmax.f32 %v955_v23, %v956_v49 }
 0x25a   :  { %v972_v3 = vpack.c.bf16 %v803_v42, %v800_v0  ;;  %2247 = vmatpush3.bf16.msra.mxu0 %v2317_v33  ;;  %v824_v51 = vadd.f32 %v2186_v61, %v2952_v52  ;;  %v926_v20 = vsel %vm353_vm2, %v803_v42, -inf  ;;  %v925_v33 = vsel %vm353_vm2, %v2961_v18, -inf }
 0x25b   :  { %v815_v47 = vpop.f32.mrf.mxu1  ;;  %v927_v61 = vmax.f32 %v925_v33, %v926_v20 }
 0x25c   :  { %2216 = vmatprep.mubr.msk.bf16.mxu0 %vm353_vm2, %v972_v3  ;;  %v816_v25 = vadd.f32 %v815_v47, %v2952_v52  ;;  %v943_v28 = vsel %vm353_vm2, %v824_v51, -inf }
 0x25d   :  { %v2187_v50 = vpop.f32.mrf.mxu1  ;;  %2217 = vmatmul.mubr.msk.bf16.gmra.mxu0 %vm353_vm2, %v973_v45 }
 0x25e   :  { %v2982_v41 = vadd.f32 %v2187_v50, %v2952_v52  ;;  %v913_v0 = vsel %vm353_vm2, %v816_v25, -inf  ;;  %v944_v50 = vmax.f32 %v942_v38, %v943_v28 }
 0x25f   :  { %v818_v34 = vpop.f32.mrf.mxu1 }
 0x260   :  { %v819_v31 = vadd.f32 %v818_v34, %v2952_v52  ;;  %v975_v56 = vpack.c.bf16 %v2982_v41, %v824_v51  ;;  %v914_v34 = vmax.f32 %v912_v32, %v913_v0 }
 0x261   :  { %v2190_v54 = vpop.f32.mrf.mxu1 }
 0x262   :  { %v974_v12 = vpack.c.bf16 %v819_v31, %v816_v25  ;;  %v840_v2 = vadd.f32 %v2190_v54, %v2952_v52  ;;  %v928_v42 = vsel %vm353_vm2, %v819_v31, -inf  ;;  %v958_v54 = vsel %vm353_vm2, %v2982_v41, -inf }
 0x263   :  { %v831_v22 = vpop.f32.mrf.mxu1  ;;  %v929_v51 = vmax.f32 %v927_v61, %v928_v42 }
 0x264   :  { %2220 = vmatprep.mubr.msk.bf16.mxu0 %vm353_vm2, %v974_v12  ;;  %v832_v62 = vadd.f32 %v831_v22, %v2952_v52 }
 0x265   :  { %v2191_v9 = vpop.f32.mrf.mxu1  ;;  %2221 = vmatmul.mubr.msk.bf16.gmra.mxu0 %vm353_vm2, %v975_v56 }
 0x266   :  { %v2991_v15 = vadd.f32 %v2191_v9, %v2952_v52  ;;  %v915_v58 = vsel %vm353_vm2, %v832_v62, -inf  ;;  %v945_v9 = vsel %vm353_vm2, %v840_v2, -inf }
 0x267   :  { %v834_v59 = vpop.f32.mrf.mxu1 }
 0x268   :  { %v835_v1 = vadd.f32 %v834_v59, %v2952_v52  ;;  %v977_v10 = vpack.c.bf16 %v2991_v15, %v840_v2  ;;  %v916_v59 = vmax.f32 %v914_v34, %v915_v58 }
 0x269   :  { %v2194_v5 = vpop.f32.mrf.mxu1 }
 0x26a   :  { %v976_v8 = vpack.c.bf16 %v835_v1, %v832_v62  ;;  %v856_v26 = vadd.f32 %v2194_v5, %v2952_v52  ;;  %v930_v18 = vsel %vm353_vm2, %v835_v1, -inf }
 0x26b   :  { %v847_v40 = vpop.f32.mrf.mxu1  ;;  %v931_v62 = vmax.f32 %v929_v51, %v930_v18 }
 0x26c   :  { %2224 = vmatprep.mubr.msk.bf16.mxu0 %vm353_vm2, %v976_v8  ;;  %v848_v39 = vadd.f32 %v847_v40, %v2952_v52  ;;  %v960_v8 = vsel %vm353_vm2, %v2991_v15, -inf }
 0x26d   :  { %v2195_v11 = vpop.f32.mrf.mxu1  ;;  %2225 = vmatmul.mubr.msk.bf16.gmra.mxu0 %vm353_vm2, %v977_v10 }
 0x26e   :  { %v3000_v30 = vadd.f32 %v2195_v11, %v2952_v52  ;;  %v917_v12 = vsel %vm353_vm2, %v848_v39, -inf  ;;  %v959_v11 = vmax.f32 %v957_v6, %v958_v54 }
 0x26f   :  { %v850_v46 = vpop.f32.mrf.mxu1 }
 0x270   :  { %v851_v35 = vadd.f32 %v850_v46, %v2952_v52  ;;  %v979_v44 = vpack.c.bf16 %v3000_v30, %v856_v26  ;;  %v947_v46 = vsel %vm353_vm2, %v856_v26, -inf  ;;  %v962_v15 = vsel %vm353_vm2, %v3000_v30, -inf }
 0x271   :  { %v2198_v37 = vpop.f32.mrf.mxu1 }
 0x272   :  { %v978_v43 = vpack.c.bf16 %v851_v35, %v848_v39  ;;  %v3014_v14 = vadd.f32 %v2198_v37, %v2952_v52  ;;  %v932_v56 = vsel %vm353_vm2, %v851_v35, -inf  ;;  %v918_v39 = vmax.f32 %v916_v59, %v917_v12 }
 0x273   :  { %v863_v13 = vpop.f32.mrf.mxu1  ;;  %v933_v2 = vmax.f32 %v931_v62, %v932_v56  ;;  %v946_v37 = vmax.f32 %v944_v50, %v945_v9 }
 0x274   :  { %2228 = vmatprep.mubr.msk.bf16.mxu0 %vm353_vm2, %v978_v43  ;;  %v864_v24 = vadd.f32 %v863_v13, %v2952_v52  ;;  %v961_v13 = vmax.f32 %v959_v11, %v960_v8  ;;  %v949_v49 = vsel %vm353_vm2, %v3014_v14, -inf }
 0x275   :  { %v2199_v16 = vpop.f32.mrf.mxu1  ;;  %2229 = vmatmul.mubr.msk.bf16.gmra.mxu0 %vm353_vm2, %v979_v44  ;;  %v948_v26 = vmax.f32 %v946_v37, %v947_v46 }
 0x276   :  { %v3009_v29 = vadd.f32 %v2199_v16, %v2952_v52  ;;  %v919_v10 = vsel %vm353_vm2, %v864_v24, -inf }
 0x277   :  { %v866_v53 = vpop.f32.mrf.mxu1  ;;  %v920_v16 = vmax.f32 %v918_v39, %v919_v10  ;;  %v950_v0 = vmax.f32 %v948_v26, %v949_v49  ;;  %v2318_v39 = vld [vmem:[%s3748_s4 + $0x18] sm:$0xff]  }
 0x278   :  { %v867_v27 = vadd.f32 %v866_v53, %v2952_v52  ;;  %v981_v19 = vpack.c.bf16 %v3009_v29, %v3014_v14  ;;  %2252 = vmatprep.subr.bf16.mxu1 %v2318_v39 }
 0x279   :  { %v2202_v48 = vpop.f32.mrf.mxu1  ;;  %2253 = vmatpush3.bf16.msra.mxu1 %v2318_v39 }
 0x27a   :  { %v980_v57 = vpack.c.bf16 %v867_v27, %v864_v24  ;;  %v888_v25 = vadd.f32 %v2202_v48, %v2952_v52  ;;  %v934_v40 = vsel %vm353_vm2, %v867_v27, -inf  ;;  %v964_v48 = vsel %vm353_vm2, %v3009_v29, -inf }
 0x27b   :  { %v879_v7 = vpop.f32.mrf.mxu1  ;;  %v935_v53 = vmax.f32 %v933_v2, %v934_v40  ;;  %v2319_v2 = vld [vmem:[%s3748_s4 + $0x10] sm:$0xff]  }
 0x27c   :  { %2232 = vmatprep.mubr.msk.bf16.mxu0 %vm353_vm2, %v980_v57  ;;  %v880_v45 = vadd.f32 %v879_v7, %v2952_v52  ;;  %v951_v38 = vsel %vm353_vm2, %v888_v25, -inf  ;;  %2254 = vmatprep.subr.bf16.mxu1 %v2319_v2 }
 0x27d   :  { %v2203_v36 = vpop.f32.mrf.mxu1  ;;  %2233 = vmatmul.mubr.msk.bf16.gmra.mxu0 %vm353_vm2, %v981_v19  ;;  %v963_v19 = vmax.f32 %v961_v13, %v962_v15  ;;  %v952_v32 = vmax.f32 %v950_v0, %v951_v38  ;;  %v2320_v15 = vld [vmem:[%s3748_s4 + $0x8] sm:$0xff]   ;;  %2255 = vmatpush3.bf16.msra.mxu1 %v2319_v2  ;;  %v2321_v13 = vld [vmem:[%s3748_s4] sm:$0xff]  }
 0x27e   :  { %v891_v55 = vadd.f32 %v2203_v36, %v2952_v52  ;;  %v921_v43 = vsel %vm353_vm2, %v880_v45, -inf  ;;  %2256 = vmatprep.subr.bf16.mxu1 %v2320_v15 }
 0x27f   :  { %v882_v3 = vpop.f32.mrf.mxu1  ;;  %v922_v30 = vmax.f32 %v920_v16, %v921_v43  ;;  %v965_v23 = vmax.f32 %v963_v19, %v964_v48 }
 0x280   :  { %v883_v47 = vadd.f32 %v882_v3, %v2952_v52  ;;  %v983_v1 = vpack.c.bf16 %v891_v55, %v888_v25  ;;  %v966_v20 = vsel %vm353_vm2, %v891_v55, -inf }
 0x281   :  { %v2206_v31 = vpop.f32.mrf.mxu1  ;;  %2257 = vmatpush3.bf16.msra.mxu1 %v2320_v15 }
 0x282   :  { %v982_v22 = vpack.c.bf16 %v883_v47, %v880_v45  ;;  %v936_v44 = vsel %vm353_vm2, %v883_v47, -inf  ;;  %v904_v21 = vadd.f32 %v2206_v31, %v2952_v52  ;;  %2258 = vmatprep.subr.bf16.mxu1 %v2321_v13 }
 0x283   :  { %v895_v5 = vpop.f32.mrf.mxu1  ;;  %v937_v7 = vmax.f32 %v935_v53, %v936_v44 }
 0x284   :  { %v896_v41 = vadd.f32 %v895_v5, %v2952_v52  ;;  %2236 = vmatprep.mubr.msk.bf16.mxu0 %vm353_vm2, %v982_v22  ;;  %v953_v14 = vsel %vm353_vm2, %v904_v21, -inf }
 0x285   :  { %v2207_v35 = vpop.f32.mrf.mxu1  ;;  %2237 = vmatmul.mubr.msk.bf16.gmra.mxu0 %vm353_vm2, %v983_v1  ;;  %v954_v61 = vmax.f32 %v952_v32, %v953_v14  ;;  %2259 = vmatpush3.bf16.msra.mxu1 %v2321_v13 }
 0x286   :  { %v907_v24 = vadd.f32 %v2207_v35, %v2952_v52  ;;  %v923_v57 = vsel %vm353_vm2, %v896_v41, -inf }
 0x287   :  { %v898_v27 = vpop.f32.mrf.mxu1  ;;  %v924_v33 = vmax.f32 %v922_v30, %v923_v57 }
 0x288   :  { %v899_v4 = vadd.f32 %v898_v27, %v2952_v52  ;;  %v985_v29 = vpack.c.bf16 %v907_v24, %v904_v21  ;;  %v968_v28 = vsel %vm353_vm2, %v907_v24, -inf  ;;  %v967_v52 = vmax.f32 %v965_v23, %v966_v20 }
 0x28a   :  { %v938_v17 = vsel %vm353_vm2, %v899_v4, -inf  ;;  %v984_v63 = vpack.c.bf16 %v899_v4, %v896_v41  ;;  %v969_v6 = vmax.f32 %v967_v52, %v968_v28 }
 0x28b   :  { %v939_v36 = vmax.f32 %v937_v7, %v938_v17 }
 0x28c   :  { %2240 = vmatprep.mubr.msk.bf16.mxu0 %vm353_vm2, %v984_v63  ;;  %v1212_v55 = vpack.c.bf16 %v969_v6, %v954_v61 }
 0x28d   :  { %v1211_v42 = vpack.c.bf16 %v939_v36, %v924_v33  ;;  %2241 = vmatmul.mubr.msk.bf16.gmra.mxu0 %vm353_vm2, %v985_v29 }
 0x28f   :  { %2248 = vmatprep.mubr.msk.bf16.mxu0 %vm353_vm2, %v1211_v42 }
 0x295   :  { %2249 = vmatmul.mubr.msk.bf16.vlgmr.msra.gmra.mxu0 %vm353_vm2, %v1212_v55 }
 0x315   :  { %v2214_v3 = vpop.f32.mrf.mxu0 }
 0x317   :  { %v1084_v58 = vpop.f32.mrf.mxu0 }
 0x319   :  { %v2215_v18 = vpop.f32.mrf.mxu0 }
 0x31b   :  { %v1087_v45 = vpop.f32.mrf.mxu0 }
 0x31d   :  { %v2218_v47 = vpop.f32.mrf.mxu0 }
 0x31f   :  { %v1100_v50 = vpop.f32.mrf.mxu0 }
 0x321   :  { %v2219_v34 = vpop.f32.mrf.mxu0 }
 0x323   :  { %v1103_v51 = vpop.f32.mrf.mxu0 }
 0x325   :  { %v3075_v25 = vpop.f32.mrf.mxu0 }
 0x327   :  { %v1116_v31 = vpop.f32.mrf.mxu0 }
 0x329   :  { %v3077_v54 = vpop.f32.mrf.mxu0 }
 0x32b   :  { %v1119_v12 = vpop.f32.mrf.mxu0 }
 0x32d   :  { %v3079_v56 = vpop.f32.mrf.mxu0 }
 0x32f   :  { %v3081_v22 = vpop.f32.mrf.mxu0 }
 0x331   :  { %v3083_v9 = vpop.f32.mrf.mxu0 }
 0x333   :  { %v3085_v59 = vpop.f32.mrf.mxu0 }
 0x335   :  { %v3087_v62 = vpop.f32.mrf.mxu0 }
 0x337   :  { %v3089_v1 = vpop.f32.mrf.mxu0 }
 0x339   :  { %v3091_v5 = vpop.f32.mrf.mxu0 }
 0x33b   :  { %v3093_v8 = vpop.f32.mrf.mxu0 }
 0x33d   :  { %v3095_v10 = vpop.f32.mrf.mxu0 }
 0x33f   :  { %v3097_v40 = vpop.f32.mrf.mxu0 }
 0x341   :  { %v3099_v41 = vpop.f32.mrf.mxu0 }
 0x343   :  { %v3101_v11 = vpop.f32.mrf.mxu0 }
 0x345   :  { %v3103_v46 = vpop.f32.mrf.mxu0 }
 0x347   :  { %v3111_v35 = vpop.f32.mrf.mxu0 }
 0x349   :  { %v3113_v37 = vpop.f32.mrf.mxu0 }
 0x34b   :  { %v3118_v43 = vpop.f32.mrf.mxu0 }
 0x34d   :  { %v2242_v44 = vpop.f32.mrf.mxu0 }
 0x34f   :  { %v3123_v16 = vpop.f32.mrf.mxu0 }
 0x351   :  { %v3125_v53 = vpop.f32.mrf.mxu0 }
 0x353   :  { %v3127_v24 = vpop.f32.mrf.mxu0 }
 0x355   :  { %v3129_v27 = vpop.f32.mrf.mxu0 }
 0x356   :  { %v3132_v26 = vadd.f32 %v3129_v27, %v2242_v44  ;;  %v3147_v7 = vadd.f32 %v3129_v27, %v2214_v3  ;;  %v3167_v28 = vadd.f32 %v3129_v27, %v2218_v47  ;;  %v3212_v44 = vadd.f32 %v3129_v27, %v3079_v56 }
 0x357   :  { %v3134_v48 = vpop.f32.mrf.mxu0 }
 0x358   :  { %v3141_v19 = vadd.f32 %v3134_v48, %v1084_v58  ;;  %v1320_v63 = vsel %vm1316_vm3, %v3147_v7, 0.0  ;;  %v3159_v23 = vadd.f32 %v3134_v48, %v1100_v50  ;;  %v1328_v6 = vsel %vm1316_vm3, %v3167_v28, 0.0 }
 0x359   :  { %v3136_v57 = vpop.f32.mrf.mxu0  ;;  %v3179_v61 = vadd.f32 %v3134_v48, %v1116_v31  ;;  %v3202_v39 = vadd.f32 %v3134_v48, %v3081_v22 }
 0x35a   :  { %v3150_v21 = vadd.f32 %v3136_v57, %v2215_v18  ;;  %v1317_v49 = vsel %vm1316_vm3, %v3141_v19, 0.0  ;;  %v1324_v0 = vsel %vm1316_vm3, %v3159_v23, 0.0  ;;  %v3172_v42 = vadd.f32 %v3136_v57, %v2219_v34 }
 0x35b   :  { %v3138_v4 = vpop.f32.mrf.mxu0  ;;  %v1332_v47 = vsel %vm1316_vm3, %v3179_v61, 0.0  ;;  %v3194_v34 = vadd.f32 %v3136_v57, %v3077_v54  ;;  %v1340_v13 = vsel %vm1316_vm3, %v3202_v39, 0.0  ;;  %v3218_v22 = vadd.f32 %v3136_v57, %v3083_v9 }
 0x35c   :  { %v3144_v30 = vadd.f32 %v3138_v4, %v1087_v45  ;;  %v1322_v29 = vsel %vm1316_vm3, %v3150_v21, 0.0  ;;  %v3164_v36 = vadd.f32 %v3138_v4, %v1103_v51  ;;  %v1330_v3 = vsel %vm1316_vm3, %v3172_v42, 0.0 }
 0x35d   :  { %v3184_v58 = vadd.f32 %v3138_v4, %v1119_v12  ;;  %v3188_v45 = vadd.f32 %v3129_v27, %v3075_v25  ;;  %v1338_v2 = vsel %vm1316_vm3, %v3194_v34, 0.0  ;;  %v3208_v15 = vadd.f32 %v3138_v4, %v3085_v59 }
 0x35e   :  { %v1318_v20 = vsel %vm1316_vm3, %v3144_v30, 0.0  ;;  %v1326_v14 = vsel %vm1316_vm3, %v3164_v36, 0.0  ;;  %v1344_v59 = vsel %vm1316_vm3, %v3212_v44, 0.0 }
 0x35f   :  { %v1319_v17 = vadd.f32 %v1318_v20, %v1317_v49  ;;  %v1334_v51 = vsel %vm1316_vm3, %v3184_v58, 0.0  ;;  %v1336_v12 = vsel %vm1316_vm3, %v3188_v45, 0.0  ;;  %v1342_v20 = vsel %vm1316_vm3, %v3208_v15, 0.0 }
 0x361   :  { %v1321_v33 = vadd.f32 %v1320_v63, %v1319_v17  ;;  %v3226_v63 = vadd.f32 %v3134_v48, %v3089_v1  ;;  %v3242_v1 = vadd.f32 %v3136_v57, %v3091_v5 }
 0x363   :  { %v1323_v38 = vadd.f32 %v1322_v29, %v1321_v33  ;;  %v1346_v33 = vsel %vm1316_vm3, %v3218_v22, 0.0  ;;  %v3232_v29 = vadd.f32 %v3138_v4, %v3093_v8 }
 0x365   :  { %v1325_v52 = vadd.f32 %v1324_v0, %v1323_v38  ;;  %v3236_v38 = vadd.f32 %v3129_v27, %v3087_v62  ;;  %v1348_v0 = vsel %vm1316_vm3, %v3226_v63, 0.0 }
 0x367   :  { %v1327_v32 = vadd.f32 %v1326_v14, %v1325_v52  ;;  %v1350_v14 = vsel %vm1316_vm3, %v3232_v29, 0.0  ;;  %v1352_v8 = vsel %vm1316_vm3, %v3236_v38, 0.0 }
 0x369   :  { %v1329_v55 = vadd.f32 %v1328_v6, %v1327_v32  ;;  %v3250_v6 = vadd.f32 %v3134_v48, %v3097_v40  ;;  %v3266_v40 = vadd.f32 %v3136_v57, %v3099_v41 }
 0x36b   :  { %v1331_v18 = vadd.f32 %v1330_v3, %v1329_v55  ;;  %v1354_v55 = vsel %vm1316_vm3, %v3242_v1, 0.0  ;;  %v3256_v3 = vadd.f32 %v3138_v4, %v3101_v11 }
 0x36d   :  { %v1333_v50 = vadd.f32 %v1332_v47, %v1331_v18  ;;  %v3260_v18 = vadd.f32 %v3129_v27, %v3095_v10  ;;  %v1356_v47 = vsel %vm1316_vm3, %v3250_v6, 0.0 }
 0x36f   :  { %v1335_v31 = vadd.f32 %v1334_v51, %v1333_v50  ;;  %v1358_v51 = vsel %vm1316_vm3, %v3256_v3, 0.0  ;;  %v1360_v11 = vsel %vm1316_vm3, %v3260_v18, 0.0 }
 0x371   :  { %v1337_v25 = vadd.f32 %v1336_v12, %v1335_v31  ;;  %v3274_v12 = vadd.f32 %v3134_v48, %v3111_v35  ;;  %v3290_v35 = vadd.f32 %v3136_v57, %v3113_v37 }
 0x373   :  { %v1339_v54 = vadd.f32 %v1338_v2, %v1337_v25  ;;  %v1362_v25 = vsel %vm1316_vm3, %v3266_v40, 0.0  ;;  %v3280_v2 = vadd.f32 %v3138_v4, %v3118_v43 }
 0x375   :  { %v1341_v49 = vadd.f32 %v1340_v13, %v1339_v54  ;;  %v3284_v54 = vadd.f32 %v3129_v27, %v3103_v46  ;;  %v1364_v13 = vsel %vm1316_vm3, %v3274_v12, 0.0  ;;  %v1370_v27 = vsel %vm1316_vm3, %v3290_v35, 0.0 }
 0x377   :  { %v1343_v17 = vadd.f32 %v1342_v20, %v1341_v49  ;;  %v1366_v20 = vsel %vm1316_vm3, %v3280_v2, 0.0  ;;  %v1368_v43 = vsel %vm1316_vm3, %v3284_v54, 0.0 }
 0x379   :  { %v1345_v56 = vadd.f32 %v1344_v59, %v1343_v17  ;;  %v3298_v59 = vadd.f32 %v3134_v48, %v3123_v16  ;;  %v1376_v16 = vsel %vm1316_vm3, %v3132_v26, 0.0  ;;  %v3314_v48 = vadd.f32 %v3136_v57, %v3125_v53 }
 0x37b   :  { %v1347_v9 = vadd.f32 %v1346_v33, %v1345_v56  ;;  %v3304_v56 = vadd.f32 %v3138_v4, %v3127_v24  ;;  %v1372_v33 = vsel %vm1316_vm3, %v3298_v59, 0.0  ;;  %v1378_v24 = vsel %vm1316_vm3, %v3314_v48, 0.0 }
 0x37d   :  { %v1349_v52 = vadd.f32 %v1348_v0, %v1347_v9  ;;  %v1374_v0 = vsel %vm1316_vm3, %v3304_v56, 0.0 }
 0x37f   :  { %v1351_v32 = vadd.f32 %v1350_v14, %v1349_v52 }
 0x381   :  { %v1353_v62 = vadd.f32 %v1352_v8, %v1351_v32 }
 0x383   :  { %v1355_v5 = vadd.f32 %v1354_v55, %v1353_v62 }
 0x385   :  { %v1357_v50 = vadd.f32 %v1356_v47, %v1355_v5 }
 0x387   :  { %v1359_v31 = vadd.f32 %v1358_v51, %v1357_v50 }
 0x389   :  { %v1361_v10 = vadd.f32 %v1360_v11, %v1359_v31 }
 0x38b   :  { %v1363_v41 = vadd.f32 %v1362_v25, %v1361_v10 }
 0x38d   :  { %v1365_v49 = vadd.f32 %v1364_v13, %v1363_v41 }
 0x38f   :  { %v1367_v17 = vadd.f32 %v1366_v20, %v1365_v49 }
 0x391   :  { %v1369_v46 = vadd.f32 %v1368_v43, %v1367_v17 }
 0x393   :  { %v1371_v37 = vadd.f32 %v1370_v27, %v1369_v46 }
 0x395   :  { %v1373_v9 = vadd.f32 %v1372_v33, %v1371_v37 }
 0x397   :  { %v1375_v52 = vadd.f32 %v1374_v0, %v1373_v9 }
 0x399   :  { %v1377_v14 = vadd.f32 %v1376_v16, %v1375_v52 }
 0x39b   :  { %v1379_v4 = vadd.f32 %v1378_v24, %v1377_v14 }
 0x39d   :  { %v1380_v32 = vrot.slane %v1379_v4, 4 }
 0x39f   :  { %v1381_v8 = vadd.f32 %v1380_v32, %v1379_v4 }
 0x3a1   :  { %v1382_v62 = vrot.slane %v1381_v8, 2 }
 0x3a3   :  { %v1383_v55 = vadd.f32 %v1382_v62, %v1381_v8 }
 0x3a5   :  { %v1384_v5 = vrot.slane %v1383_v55, 1 }
 0x3a7   :  { %v1385_v47 = vadd.f32 %v1384_v5, %v1383_v55 }
 0x3a9   :  { %v3318_v50 = vmul.f32 0.00390625, %v1385_v47 }
 0x3ab   :  { %v3322_v51 = vsub.f32 %v3147_v7, %v3318_v50  ;;  %v3326_v53 = vsub.f32 %v3150_v21, %v3318_v50  ;;  %v3330_v57 = vsub.f32 %v3141_v19, %v3318_v50  ;;  %v3334_v31 = vsub.f32 %v3144_v30, %v3318_v50 }
 0x3ac   :  { %v3338_v11 = vsub.f32 %v3159_v23, %v3318_v50  ;;  %v3348_v19 = vsub.f32 %v3164_v36, %v3318_v50  ;;  %v3356_v13 = vsub.f32 %v3167_v28, %v3318_v50  ;;  %v3365_v43 = vsub.f32 %v3172_v42, %v3318_v50 }
 0x3ad   :  { %v1421_v7 = vmul.f32 %v3322_v51, %v3322_v51  ;;  %v1419_v10 = vmul.f32 %v3330_v57, %v3330_v57  ;;  %v1420_v21 = vmul.f32 %v3334_v31, %v3334_v31  ;;  %v1422_v30 = vmul.f32 %v3326_v53, %v3326_v53 }
 0x3ae   :  { %v1423_v49 = vmul.f32 %v3338_v11, %v3338_v11  ;;  %v1424_v36 = vmul.f32 %v3348_v19, %v3348_v19  ;;  %v3370_v28 = vsub.f32 %v3179_v61, %v3318_v50  ;;  %v1425_v37 = vmul.f32 %v3356_v13, %v3356_v13 }
 0x3af   :  { %v1451_v25 = vsel %vm1316_vm3, %v1419_v10, 0.0  ;;  %v1452_v23 = vsel %vm1316_vm3, %v1420_v21, 0.0  ;;  %v1454_v20 = vsel %vm1316_vm3, %v1421_v7, 0.0  ;;  %v1456_v46 = vsel %vm1316_vm3, %v1422_v30, 0.0 }
 0x3b0   :  { %v1453_v41 = vadd.f32 %v1452_v23, %v1451_v25  ;;  %v1458_v33 = vsel %vm1316_vm3, %v1423_v49, 0.0  ;;  %v3377_v0 = vsub.f32 %v3184_v58, %v3318_v50  ;;  %v1460_v42 = vsel %vm1316_vm3, %v1424_v36, 0.0 }
 0x3b1   :  { %v1426_v52 = vmul.f32 %v3365_v43, %v3365_v43  ;;  %v3384_v61 = vsub.f32 %v3188_v45, %v3318_v50  ;;  %v1427_v14 = vmul.f32 %v3370_v28, %v3370_v28  ;;  %v1462_v24 = vsel %vm1316_vm3, %v1425_v37, 0.0 }
 0x3b2   :  { %v1455_v17 = vadd.f32 %v1454_v20, %v1453_v41  ;;  %v1428_v58 = vmul.f32 %v3377_v0, %v3377_v0  ;;  %v3393_v32 = vsub.f32 %v3194_v34, %v3318_v50  ;;  %v3398_v45 = vsub.f32 %v3202_v39, %v3318_v50 }
 0x3b3   :  { %v1464_v8 = vsel %vm1316_vm3, %v1426_v52, 0.0  ;;  %v1429_v55 = vmul.f32 %v3384_v61, %v3384_v61  ;;  %v1466_v5 = vsel %vm1316_vm3, %v1427_v14, 0.0  ;;  %v3405_v7 = vsub.f32 %v3208_v15, %v3318_v50 }
 0x3b4   :  { %v1457_v27 = vadd.f32 %v1456_v46, %v1455_v17  ;;  %v1468_v34 = vsel %vm1316_vm3, %v1428_v58, 0.0  ;;  %v1430_v10 = vmul.f32 %v3393_v32, %v3393_v32  ;;  %v3412_v39 = vsub.f32 %v3212_v44, %v3318_v50 }
 0x3b5   :  { %v1431_v30 = vmul.f32 %v3398_v45, %v3398_v45  ;;  %v1470_v25 = vsel %vm1316_vm3, %v1429_v55, 0.0  ;;  %v1432_v15 = vmul.f32 %v3405_v7, %v3405_v7  ;;  %v3421_v41 = vsub.f32 %v3218_v22, %v3318_v50 }
 0x3b6   :  { %v1459_v9 = vadd.f32 %v1458_v33, %v1457_v27  ;;  %v1472_v49 = vsel %vm1316_vm3, %v1430_v10, 0.0  ;;  %v3426_v44 = vsub.f32 %v3226_v63, %v3318_v50  ;;  %v1433_v17 = vmul.f32 %v3412_v39, %v3412_v39 }
 0x3b7   :  { %v1474_v36 = vsel %vm1316_vm3, %v1431_v30, 0.0  ;;  %v3433_v27 = vsub.f32 %v3232_v29, %v3318_v50  ;;  %v1476_v22 = vsel %vm1316_vm3, %v1432_v15, 0.0  ;;  %v1434_v37 = vmul.f32 %v3421_v41, %v3421_v41 }
 0x3b8   :  { %v1461_v16 = vadd.f32 %v1460_v42, %v1459_v9  ;;  %v3440_v63 = vsub.f32 %v3236_v38, %v3318_v50  ;;  %v1435_v9 = vmul.f32 %v3426_v44, %v3426_v44  ;;  %v1478_v42 = vsel %vm1316_vm3, %v1433_v17, 0.0 }
 0x3b9   :  { %v1436_v29 = vmul.f32 %v3433_v27, %v3433_v27  ;;  %v1480_v14 = vsel %vm1316_vm3, %v1434_v37, 0.0  ;;  %v3454_v38 = vsub.f32 %v3250_v6, %v3318_v50  ;;  %v3468_v6 = vsub.f32 %v3260_v18, %v3318_v50 }
 0x3ba   :  { %v1463_v4 = vadd.f32 %v1462_v24, %v1461_v16  ;;  %v3449_v16 = vsub.f32 %v3242_v1, %v3318_v50  ;;  %v1482_v58 = vsel %vm1316_vm3, %v1435_v9, 0.0  ;;  %v3482_v18 = vsub.f32 %v3274_v12, %v3318_v50 }
 0x3bb   :  { %v1484_v1 = vsel %vm1316_vm3, %v1436_v29, 0.0  ;;  %v3496_v12 = vsub.f32 %v3284_v54, %v3318_v50  ;;  %v3510_v54 = vsub.f32 %v3298_v59, %v3318_v50  ;;  %v3524_v59 = vsub.f32 %v3132_v26, %v3318_v50 }
 0x3bc   :  { %v1465_v62 = vadd.f32 %v1464_v8, %v1463_v4  ;;  %v1437_v4 = vmul.f32 %v3440_v63, %v3440_v63  ;;  %v1438_v55 = vmul.f32 %v3449_v16, %v3449_v16 }
 0x3bd   :  { %v1449_v26 = vmul.f32 %v3524_v59, %v3524_v59 }
 0x3be   :  { %v1467_v47 = vadd.f32 %v1466_v5, %v1465_v62  ;;  %v3461_v62 = vsub.f32 %v3256_v3, %v3318_v50  ;;  %v1488_v30 = vsel %vm1316_vm3, %v1438_v55, 0.0 }
 0x3c0   :  { %v1469_v21 = vadd.f32 %v1468_v34, %v1467_v47  ;;  %v1439_v47 = vmul.f32 %v3454_v38, %v3454_v38  ;;  %v1486_v34 = vsel %vm1316_vm3, %v1437_v4, 0.0  ;;  %v1440_v3 = vmul.f32 %v3461_v62, %v3461_v62 }
 0x3c2   :  { %v1471_v23 = vadd.f32 %v1470_v25, %v1469_v21  ;;  %v3477_v21 = vsub.f32 %v3266_v40, %v3318_v50  ;;  %v1490_v15 = vsel %vm1316_vm3, %v1439_v47, 0.0  ;;  %v1492_v40 = vsel %vm1316_vm3, %v1440_v3, 0.0 }
 0x3c4   :  { %v1473_v20 = vadd.f32 %v1472_v49, %v1471_v23  ;;  %v1441_v23 = vmul.f32 %v3468_v6, %v3468_v6  ;;  %v1442_v17 = vmul.f32 %v3477_v21, %v3477_v21 }
 0x3c6   :  { %v1475_v46 = vadd.f32 %v1474_v36, %v1473_v20  ;;  %v3489_v20 = vsub.f32 %v3280_v2, %v3318_v50  ;;  %v1496_v9 = vsel %vm1316_vm3, %v1442_v17, 0.0 }
 0x3c8   :  { %v1477_v33 = vadd.f32 %v1476_v22, %v1475_v46  ;;  %v1443_v46 = vmul.f32 %v3482_v18, %v3482_v18  ;;  %v1494_v22 = vsel %vm1316_vm3, %v1441_v23, 0.0  ;;  %v1444_v2 = vmul.f32 %v3489_v20, %v3489_v20 }
 0x3ca   :  { %v1479_v52 = vadd.f32 %v1478_v42, %v1477_v33  ;;  %v3505_v33 = vsub.f32 %v3290_v35, %v3318_v50  ;;  %v1498_v29 = vsel %vm1316_vm3, %v1443_v46, 0.0  ;;  %v1500_v35 = vsel %vm1316_vm3, %v1444_v2, 0.0 }
 0x3cc   :  { %v1481_v24 = vadd.f32 %v1480_v14, %v1479_v52  ;;  %v1445_v52 = vmul.f32 %v3496_v12, %v3496_v12  ;;  %v1446_v4 = vmul.f32 %v3505_v33, %v3505_v33 }
 0x3ce   :  { %v1483_v8 = vadd.f32 %v1482_v58, %v1481_v24  ;;  %v3517_v24 = vsub.f32 %v3304_v56, %v3318_v50  ;;  %v1504_v47 = vsel %vm1316_vm3, %v1446_v4, 0.0 }
 0x3d0   :  { %v1485_v5 = vadd.f32 %v1484_v1, %v1483_v8  ;;  %v1447_v8 = vmul.f32 %v3510_v54, %v3510_v54  ;;  %v1502_v1 = vsel %vm1316_vm3, %v1445_v52, 0.0  ;;  %v1448_v56 = vmul.f32 %v3517_v24, %v3517_v24 }
 0x3d1   :  { %v1526_v52 = vsub.s32 3, %v2820_v60 }
 0x3d2   :  { %v1487_v10 = vadd.f32 %v1486_v34, %v1485_v5  ;;  %v3533_v5 = vsub.f32 %v3314_v48, %v3318_v50 }
 0x3d4   :  { %v1489_v25 = vadd.f32 %v1488_v30, %v1487_v10  ;;  %v1506_v10 = vsel %vm1316_vm3, %v1447_v8, 0.0  ;;  %v1508_v30 = vsel %vm1316_vm3, %v1448_v56, 0.0 }
 0x3d6   :  { %v1491_v49 = vadd.f32 %v1490_v15, %v1489_v25  ;;  %v1450_v25 = vmul.f32 %v3533_v5, %v3533_v5  ;;  %v1510_v15 = vsel %vm1316_vm3, %v1449_v26, 0.0 }
 0x3d8   :  { %v1493_v36 = vadd.f32 %v1492_v40, %v1491_v49  ;;  %v1512_v48 = vsel %vm1316_vm3, %v1450_v25, 0.0 }
 0x3da   :  { %v1495_v37 = vadd.f32 %v1494_v22, %v1493_v36 }
 0x3dc   :  { %v1497_v42 = vadd.f32 %v1496_v9, %v1495_v37 }
 0x3de   :  { %v1499_v14 = vadd.f32 %v1498_v29, %v1497_v42  ;;  %v1562_v42 = vsub.s32 4, %v2820_v60 }
 0x3e0   :  { %v1501_v58 = vadd.f32 %v1500_v35, %v1499_v14  ;;  %v3549_v14 = vld [vmem:[%s3749_s5] sm:$0x3f]  ;;  %s2349_s5 = smov [#allocation2]  }
 0x3e1   :  { %v3553_v4 = vrot.slane %v3549_v14, %v1562_v42  ;;  %s1958_s25 = sshll.u32 %s2349_s5, 4  ;;  %s1959_s25 = int_to_ptr.vmem [resolvable:$true] %s1958_s25 }
 0x3e2   :  { %v1503_v55 = vadd.f32 %v1502_v1, %v1501_v58  ;;  %s2327_s26 = scalar_lea.vmem %s1959_s25, 512  ;;  %p2332_p1 = scmp.lt.s32.totalorder %s1959_s25, %s1959_s25 }
 0x3e3   :  { %p2328_p0 = scmp.ne.s32.totalorder %s1959_s25, %s2327_s26  ;;  %p2333_p2 = scmp.lt.s32.totalorder %s2327_s26, %s2327_s26 }
 0x3e4   :  { %v1505_v34 = vadd.f32 %v1504_v47, %v1503_v55 }
 0x3e5   :  { %p2334_p3 = por %p2333_p2, %p2332_p1 }
 0x3e6   :  { %v1507_v3 = vadd.f32 %v1506_v10, %v1505_v34 }
 0x3e7   :  { %p2335_p4 = pnand %p2334_p3, %p2328_p0 }
 0x3e8   :  { %v1509_v23 = vadd.f32 %v1508_v30, %v1507_v3 }
 0x3ea   :  { %v1511_v49 = vadd.f32 %v1510_v15, %v1509_v23 }
 0x3ec   :  { %v1513_v50 = vadd.f32 %v1512_v48, %v1511_v49 }
 0x3ee   :  { %v1514_v40 = vrot.slane %v1513_v50, 4 }
 0x3f0   :  { %v1515_v17 = vadd.f32 %v1514_v40, %v1513_v50 }
 0x3f2   :  { %v1516_v36 = vrot.slane %v1515_v17, 2 }
 0x3f4   :  { %v1517_v46 = vadd.f32 %v1516_v36, %v1515_v17 }
 0x3f6   :  { %v1518_v22 = vrot.slane %v1517_v46, 1 }
 0x3f8   :  { %v1519_v37 = vadd.f32 %v1518_v22, %v1517_v46 }
 0x3fa   :  { %v1520_v2 = vmul.f32 0.00390625, %v1519_v37 }
 0x3fc   :  { %v1521_v9 = vadd.f32 1e-05, %v1520_v2 }
 0x3fe   :  { %2324 = vrsqrt.f32 %v1521_v9 }
 0x40b   :  { %v2325_v29 = vpop.eup %2324 }
 0x40c   :  { %v1523_v35 = vmul.f32 %v3549_v14, %v2325_v29 }
 0x40e   :  { %v3555_v58 = vrot.slane %v1523_v35, %v1526_v52 }
 0x410   :  { %v1528_v8 = vmul.f32 %v3555_v58, %v3330_v57  ;;  %v1529_v1 = vmul.f32 %v3555_v58, %v3334_v31  ;;  %v1530_v55 = vmul.f32 %v3555_v58, %v3322_v51  ;;  %v1531_v56 = vmul.f32 %v3555_v58, %v3326_v53 }
 0x411   :  { %v1532_v47 = vmul.f32 %v3555_v58, %v3338_v11  ;;  %v1533_v34 = vmul.f32 %v3555_v58, %v3348_v19  ;;  %v1534_v53 = vmul.f32 %v3555_v58, %v3356_v13  ;;  %v1535_v11 = vmul.f32 %v3555_v58, %v3365_v43 }
 0x412   :  { %v1564_v26 = vadd.f32 %v3553_v4, %v1528_v8  ;;  %v1565_v10 = vadd.f32 %v3553_v4, %v1529_v1  ;;  %v1566_v57 = vadd.f32 %v3553_v4, %v1530_v55  ;;  %v1567_v31 = vadd.f32 %v3553_v4, %v1531_v56 }
 0x413   :  { %v1568_v3 = vadd.f32 %v3553_v4, %v1532_v47  ;;  %v1569_v51 = vadd.f32 %v3553_v4, %v1533_v34  ;;  %v1536_v40 = vmul.f32 %v3555_v58, %v3370_v28  ;;  %v1537_v17 = vmul.f32 %v3555_v58, %v3377_v0 }
 0x414   :  { %v1596_v30 = vmax.f32 %v1564_v26, 0.0  ;;  %v1597_v19 = vmax.f32 %v1565_v10, 0.0  ;;  %v1598_v25 = vmax.f32 %v1566_v57, 0.0  ;;  %v1599_v23 = vmax.f32 %v1567_v31, 0.0 }
 0x415   :  { %v1600_v15 = vmax.f32 %v1568_v3, 0.0  ;;  %v1601_v49 = vmax.f32 %v1569_v51, 0.0  ;;  %v1570_v36 = vadd.f32 %v3553_v4, %v1534_v53  ;;  %v1571_v13 = vadd.f32 %v3553_v4, %v1535_v11 }
 0x416   :  { %v1628_v48 = vpack.c.bf16 %v1597_v19, %v1596_v30  ;;  %v1629_v50 = vpack.c.bf16 %v1599_v23, %v1598_v25  ;;  %v1572_v46 = vadd.f32 %v3553_v4, %v1536_v40  ;;  %v1573_v22 = vadd.f32 %v3553_v4, %v1537_v17 }
 0x417   :  { %v1630_v43 = vpack.c.bf16 %v1601_v49, %v1600_v15  ;;  %v1602_v37 = vmax.f32 %v1570_v36, 0.0  ;;  %v1603_v28 = vmax.f32 %v1571_v13, 0.0  ;;  %v1538_v0 = vmul.f32 %v3555_v58, %v3384_v61 }
 0x418   :  { %2260 = vmatprep.mubr.msk.bf16.mxu1 %vm1316_vm3, %v1628_v48  ;;  %v1539_v2 = vmul.f32 %v3555_v58, %v3393_v32  ;;  %v1604_v9 = vmax.f32 %v1572_v46, 0.0  ;;  %v1605_v42 = vmax.f32 %v1573_v22, 0.0  ;;  %v1540_v52 = vmul.f32 %v3555_v58, %v3398_v45 }
 0x419   :  { %2261 = vmatmul.mubr.msk.bf16.vlgmr.msra.gmra.mxu1 %vm1316_vm3, %v1629_v50  ;;  %v1541_v29 = vmul.f32 %v3555_v58, %v3405_v7  ;;  %v1631_v35 = vpack.c.bf16 %v1603_v28, %v1602_v37  ;;  %v1574_v8 = vadd.f32 %v3553_v4, %v1538_v0  ;;  %v1542_v45 = vmul.f32 %v3555_v58, %v3412_v39 }
 0x41a   :  { %2264 = vmatprep.mubr.msk.bf16.mxu1 %vm1316_vm3, %v1630_v43  ;;  %v1575_v1 = vadd.f32 %v3553_v4, %v1539_v2  ;;  %v1632_v55 = vpack.c.bf16 %v1605_v42, %v1604_v9  ;;  %v1576_v56 = vadd.f32 %v3553_v4, %v1540_v52  ;;  %v1543_v7 = vmul.f32 %v3555_v58, %v3421_v41 }
 0x41b   :  { %v1577_v61 = vadd.f32 %v3553_v4, %v1541_v29  ;;  %v1606_v32 = vmax.f32 %v1574_v8, 0.0  ;;  %v1544_v10 = vmul.f32 %v3555_v58, %v3426_v44  ;;  %v1545_v57 = vmul.f32 %v3555_v58, %v3433_v27 }
 0x41c   :  { %v1607_v47 = vmax.f32 %v1575_v1, 0.0  ;;  %v1608_v34 = vmax.f32 %v1576_v56, 0.0  ;;  %v1578_v3 = vadd.f32 %v3553_v4, %v1542_v45  ;;  %v1579_v51 = vadd.f32 %v3553_v4, %v1543_v7 }
 0x41d   :  { %v1609_v26 = vmax.f32 %v1577_v61, 0.0  ;;  %v1580_v11 = vadd.f32 %v3553_v4, %v1544_v10  ;;  %v1581_v39 = vadd.f32 %v3553_v4, %v1545_v57  ;;  %v1546_v44 = vmul.f32 %v3555_v58, %v3440_v63 }
 0x41e   :  { %v1633_v31 = vpack.c.bf16 %v1607_v47, %v1606_v32  ;;  %v1610_v41 = vmax.f32 %v1578_v3, 0.0  ;;  %v1611_v30 = vmax.f32 %v1579_v51, 0.0  ;;  %v1547_v27 = vmul.f32 %v3555_v58, %v3449_v16 }
 0x41f   :  { %v1634_v53 = vpack.c.bf16 %v1609_v26, %v1608_v34  ;;  %v1612_v19 = vmax.f32 %v1580_v11, 0.0  ;;  %v1613_v25 = vmax.f32 %v1581_v39, 0.0  ;;  %v1548_v23 = vmul.f32 %v3555_v58, %v3454_v38 }
 0x420   :  { %v1549_v15 = vmul.f32 %v3555_v58, %v3461_v62  ;;  %v1635_v49 = vpack.c.bf16 %v1611_v30, %v1610_v41  ;;  %v1582_v48 = vadd.f32 %v3553_v4, %v1546_v44  ;;  %v1583_v50 = vadd.f32 %v3553_v4, %v1547_v27 }
 0x421   :  { %2265 = vmatmul.mubr.msk.bf16.gmra.mxu1 %vm1316_vm3, %v1631_v35  ;;  %v1636_v40 = vpack.c.bf16 %v1613_v25, %v1612_v19  ;;  %v1584_v17 = vadd.f32 %v3553_v4, %v1548_v23  ;;  %v1550_v38 = vmul.f32 %v3555_v58, %v3468_v6  ;;  %v1551_v62 = vmul.f32 %v3555_v58, %v3477_v21 }
 0x422   :  { %2268 = vmatprep.mubr.msk.bf16.mxu1 %vm1316_vm3, %v1632_v55  ;;  %v1585_v63 = vadd.f32 %v3553_v4, %v1549_v15  ;;  %v1614_v16 = vmax.f32 %v1582_v48, 0.0  ;;  %v1615_v36 = vmax.f32 %v1583_v50, 0.0  ;;  %v1552_v46 = vmul.f32 %v3555_v58, %v3482_v18 }
 0x423   :  { %v1616_v13 = vmax.f32 %v1584_v17, 0.0  ;;  %v1553_v22 = vmul.f32 %v3555_v58, %v3489_v20  ;;  %v1586_v28 = vadd.f32 %v3553_v4, %v1550_v38  ;;  %v1587_v0 = vadd.f32 %v3553_v4, %v1551_v62 }
 0x424   :  { %v1617_v43 = vmax.f32 %v1585_v63, 0.0  ;;  %v1637_v37 = vpack.c.bf16 %v1615_v36, %v1614_v16  ;;  %v1588_v9 = vadd.f32 %v3553_v4, %v1552_v46  ;;  %v1554_v18 = vmul.f32 %v3555_v58, %v3496_v12 }
 0x425   :  { %v1589_v6 = vadd.f32 %v3553_v4, %v1553_v22  ;;  %v1618_v21 = vmax.f32 %v1586_v28, 0.0  ;;  %v1619_v42 = vmax.f32 %v1587_v0, 0.0  ;;  %v1555_v20 = vmul.f32 %v3555_v58, %v3505_v33 }
 0x426   :  { %v1638_v2 = vpack.c.bf16 %v1617_v43, %v1616_v13  ;;  %v1620_v52 = vmax.f32 %v1588_v9, 0.0  ;;  %v1556_v35 = vmul.f32 %v3555_v58, %v3510_v54  ;;  %v1557_v8 = vmul.f32 %v3555_v58, %v3517_v24 }
 0x427   :  { %v1621_v29 = vmax.f32 %v1589_v6, 0.0  ;;  %v1639_v1 = vpack.c.bf16 %v1619_v42, %v1618_v21  ;;  %v1590_v55 = vadd.f32 %v3553_v4, %v1554_v18  ;;  %v1591_v56 = vadd.f32 %v3553_v4, %v1555_v20 }
 0x428   :  { %v1592_v32 = vadd.f32 %v3553_v4, %v1556_v35  ;;  %v1593_v12 = vadd.f32 %v3553_v4, %v1557_v8  ;;  %v1558_v54 = vmul.f32 %v3555_v58, %v3524_v59  ;;  %v1559_v24 = vmul.f32 %v3555_v58, %v3533_v5 }
 0x429   :  { %2269 = vmatmul.mubr.msk.bf16.gmra.mxu1 %vm1316_vm3, %v1633_v31  ;;  %v1640_v61 = vpack.c.bf16 %v1621_v29, %v1620_v52  ;;  %v1622_v33 = vmax.f32 %v1590_v55, 0.0  ;;  %v1623_v47 = vmax.f32 %v1591_v56, 0.0  ;;  %v1654_v48 = vsub.s32 5, %v2820_v60 }
 0x42a   :  { %2272 = vmatprep.mubr.msk.bf16.mxu1 %vm1316_vm3, %v1634_v53  ;;  %v1624_v45 = vmax.f32 %v1592_v32, 0.0  ;;  %v1625_v7 = vmax.f32 %v1593_v12, 0.0  ;;  %v1594_v26 = vadd.f32 %v3553_v4, %v1558_v54  ;;  %v1595_v10 = vadd.f32 %v3553_v4, %v1559_v24 }
 0x42b   :  { %v1641_v34 = vpack.c.bf16 %v1623_v47, %v1622_v33  ;;  %v3671_v17 = vrot.slane %v3549_v14, %v1654_v48 }
 0x42c   :  { %v1642_v57 = vpack.c.bf16 %v1625_v7, %v1624_v45  ;;  %v1626_v31 = vmax.f32 %v1594_v26, 0.0  ;;  %v1627_v3 = vmax.f32 %v1595_v10, 0.0 }
 0x42e   :  { %v1643_v51 = vpack.c.bf16 %v1627_v3, %v1626_v31 }
 0x431   :  { %2273 = vmatmul.mubr.msk.bf16.gmra.mxu1 %vm1316_vm3, %v1635_v49 }
 0x432   :  { %2276 = vmatprep.mubr.msk.bf16.mxu1 %vm1316_vm3, %v1636_v40 }
 0x439   :  { %2277 = vmatmul.mubr.msk.bf16.gmra.mxu1 %vm1316_vm3, %v1637_v37 }
 0x43a   :  { %2280 = vmatprep.mubr.msk.bf16.mxu1 %vm1316_vm3, %v1638_v2 }
 0x441   :  { %2281 = vmatmul.mubr.msk.bf16.gmra.mxu1 %vm1316_vm3, %v1639_v1 }
 0x442   :  { %2284 = vmatprep.mubr.msk.bf16.mxu1 %vm1316_vm3, %v1640_v61 }
 0x449   :  { %2285 = vmatmul.mubr.msk.bf16.gmra.mxu1 %vm1316_vm3, %v1641_v34 }
 0x44a   :  { %2288 = vmatprep.mubr.msk.bf16.mxu1 %vm1316_vm3, %v1642_v57 }
 0x451   :  { %2289 = vmatmul.mubr.msk.bf16.gmra.mxu1 %vm1316_vm3, %v1643_v51 }
 0x4d9   :  { %v2262_v59 = vpop.f32.mrf.mxu1 }
 0x4da   :  { %v1771_v62 = vadd.f32 %v2262_v59, %v3671_v17 }
 0x4db   :  { %v1762_v53 = vpop.f32.mrf.mxu1 }
 0x4dc   :  { %v1763_v13 = vadd.f32 %v1762_v53, %v3671_v17  ;;  %v1919_v21 = vsel %vm353_vm2, %v1771_v62, -inf }
 0x4dd   :  { %v2263_v5 = vpop.f32.mrf.mxu1 }
 0x4de   :  { %v1774_v14 = vadd.f32 %v2263_v5, %v3671_v17  ;;  %v1889_v42 = vsel %vm353_vm2, %v1763_v13, -inf }
 0x4df   :  { %v1765_v58 = vpop.f32.mrf.mxu1 }
 0x4e0   :  { %v1766_v37 = vadd.f32 %v1765_v58, %v3671_v17  ;;  %v1934_v1 = vsel %vm353_vm2, %v1774_v14, -inf }
 0x4e1   :  { %v2266_v11 = vpop.f32.mrf.mxu1 }
 0x4e2   :  { %v1787_v36 = vadd.f32 %v2266_v11, %v3671_v17  ;;  %v1904_v55 = vsel %vm353_vm2, %v1766_v37, -inf }
 0x4e3   :  { %v1778_v39 = vpop.f32.mrf.mxu1 }
 0x4e4   :  { %v1779_v38 = vadd.f32 %v1778_v39, %v3671_v17  ;;  %v1920_v0 = vsel %vm353_vm2, %v1787_v36, -inf }
 0x4e5   :  { %v2267_v41 = vpop.f32.mrf.mxu1  ;;  %v1921_v56 = vmax.f32 %v1919_v21, %v1920_v0 }
 0x4e6   :  { %v1790_v43 = vadd.f32 %v2267_v41, %v3671_v17  ;;  %v1890_v2 = vsel %vm353_vm2, %v1779_v38, -inf }
 0x4e7   :  { %v1781_v30 = vpop.f32.mrf.mxu1  ;;  %v1891_v61 = vmax.f32 %v1889_v42, %v1890_v2 }
 0x4e8   :  { %v1782_v60 = vadd.f32 %v1781_v30, %v3671_v17  ;;  %v1935_v18 = vsel %vm353_vm2, %v1790_v43, -inf }
 0x4e9   :  { %v2270_v44 = vpop.f32.mrf.mxu1  ;;  %v1936_v24 = vmax.f32 %v1934_v1, %v1935_v18 }
 0x4ea   :  { %v1803_v22 = vadd.f32 %v2270_v44, %v3671_v17  ;;  %v1905_v52 = vsel %vm353_vm2, %v1782_v60, -inf }
 0x4eb   :  { %v1794_v4 = vpop.f32.mrf.mxu1  ;;  %v1906_v45 = vmax.f32 %v1904_v55, %v1905_v52 }
 0x4ec   :  { %v1795_v9 = vadd.f32 %v1794_v4, %v3671_v17  ;;  %v1922_v29 = vsel %vm353_vm2, %v1803_v22, -inf }
 0x4ed   :  { %v2271_v27 = vpop.f32.mrf.mxu1  ;;  %v1923_v7 = vmax.f32 %v1921_v56, %v1922_v29 }
 0x4ee   :  { %v1806_v6 = vadd.f32 %v2271_v27, %v3671_v17  ;;  %v1892_v12 = vsel %vm353_vm2, %v1795_v9, -inf }
 0x4ef   :  { %v1797_v19 = vpop.f32.mrf.mxu1  ;;  %v1893_v51 = vmax.f32 %v1891_v61, %v1892_v12 }
 0x4f0   :  { %v1798_v35 = vadd.f32 %v1797_v19, %v3671_v17  ;;  %v1937_v33 = vsel %vm353_vm2, %v1806_v6, -inf }
 0x4f1   :  { %v2274_v25 = vpop.f32.mrf.mxu1  ;;  %v1938_v59 = vmax.f32 %v1936_v24, %v1937_v33 }
 0x4f2   :  { %v1819_v8 = vadd.f32 %v2274_v25, %v3671_v17  ;;  %v1907_v10 = vsel %vm353_vm2, %v1798_v35, -inf }
 0x4f3   :  { %v1810_v23 = vpop.f32.mrf.mxu1  ;;  %v1908_v44 = vmax.f32 %v1906_v45, %v1907_v10 }
 0x4f4   :  { %v1811_v47 = vadd.f32 %v1810_v23, %v3671_v17  ;;  %v1924_v57 = vsel %vm353_vm2, %v1819_v8, -inf }
 0x4f5   :  { %v2275_v15 = vpop.f32.mrf.mxu1  ;;  %v1925_v4 = vmax.f32 %v1923_v7, %v1924_v57 }
 0x4f6   :  { %v1822_v34 = vadd.f32 %v2275_v15, %v3671_v17  ;;  %v1894_v11 = vsel %vm353_vm2, %v1811_v47, -inf }
 0x4f7   :  { %v1813_v49 = vpop.f32.mrf.mxu1 }
 0x4f8   :  { %v1814_v53 = vadd.f32 %v1813_v49, %v3671_v17  ;;  %v1939_v27 = vsel %vm353_vm2, %v1822_v34, -inf }
 0x4f9   :  { %v2278_v50 = vpop.f32.mrf.mxu1 }
 0x4fa   :  { %v1835_v54 = vadd.f32 %v2278_v50, %v3671_v17  ;;  %v1895_v50 = vmax.f32 %v1893_v51, %v1894_v11 }
 0x4fb   :  { %v1826_v40 = vpop.f32.mrf.mxu1 }
 0x4fc   :  { %v1827_v31 = vadd.f32 %v1826_v40, %v3671_v17  ;;  %v1926_v39 = vsel %vm353_vm2, %v1835_v54, -inf  ;;  %v1909_v40 = vsel %vm353_vm2, %v1814_v53, -inf }
 0x4fd   :  { %v2279_v63 = vpop.f32.mrf.mxu1  ;;  %v1910_v6 = vmax.f32 %v1908_v44, %v1909_v40 }
 0x4fe   :  { %v1838_v5 = vadd.f32 %v2279_v63, %v3671_v17  ;;  %v1896_v23 = vsel %vm353_vm2, %v1827_v31, -inf  ;;  %v1927_v63 = vmax.f32 %v1925_v4, %v1926_v39 }
 0x4ff   :  { %v1829_v16 = vpop.f32.mrf.mxu1  ;;  %v1897_v60 = vmax.f32 %v1895_v50, %v1896_v23 }
 0x500   :  { %v1830_v19 = vadd.f32 %v1829_v16, %v3671_v17  ;;  %v1941_v36 = vsel %vm353_vm2, %v1838_v5, -inf }
 0x501   :  { %v2282_v46 = vpop.f32.mrf.mxu1 }
 0x502   :  { %v1851_v3 = vadd.f32 %v2282_v46, %v3671_v17  ;;  %v1940_v46 = vmax.f32 %v1938_v59, %v1939_v27  ;;  %v1911_v22 = vsel %vm353_vm2, %v1830_v19, -inf }
 0x503   :  { %v1842_v28 = vpop.f32.mrf.mxu1  ;;  %v1912_v1 = vmax.f32 %v1910_v6, %v1911_v22 }
 0x504   :  { %v1843_v41 = vadd.f32 %v1842_v28, %v3671_v17  ;;  %v1928_v15 = vsel %vm353_vm2, %v1851_v3, -inf  ;;  %v1942_v21 = vmax.f32 %v1940_v46, %v1941_v36 }
 0x505   :  { %v2283_v20 = vpop.f32.mrf.mxu1  ;;  %v1929_v14 = vmax.f32 %v1927_v63, %v1928_v15 }
 0x506   :  { %v1854_v49 = vadd.f32 %v2283_v20, %v3671_v17  ;;  %v1898_v62 = vsel %vm353_vm2, %v1843_v41, -inf }
 0x507   :  { %v1845_v32 = vpop.f32.mrf.mxu1  ;;  %v1899_v42 = vmax.f32 %v1897_v60, %v1898_v62 }
 0x508   :  { %v1846_v16 = vadd.f32 %v1845_v32, %v3671_v17  ;;  %v1943_v28 = vsel %vm353_vm2, %v1854_v49, -inf }
 0x509   :  { %v2286_v26 = vpop.f32.mrf.mxu1  ;;  %v1944_v55 = vmax.f32 %v1942_v21, %v1943_v28 }
 0x50a   :  { %v1867_v30 = vadd.f32 %v2286_v26, %v3671_v17  ;;  %v1913_v52 = vsel %vm353_vm2, %v1846_v16, -inf }
 0x50b   :  { %v1858_v58 = vpop.f32.mrf.mxu1  ;;  %v1914_v54 = vmax.f32 %v1912_v1, %v1913_v52 }
 0x50c   :  { %v1859_v48 = vadd.f32 %v1858_v58, %v3671_v17  ;;  %v1930_v13 = vsel %vm353_vm2, %v1867_v30, -inf }
 0x50d   :  { %v2287_v25 = vpop.f32.mrf.mxu1  ;;  %v1931_v18 = vmax.f32 %v1929_v14, %v1930_v13 }
 0x50e   :  { %v1870_v43 = vadd.f32 %v2287_v25, %v3671_v17  ;;  %v1900_v0 = vsel %vm353_vm2, %v1859_v48, -inf }
 0x50f   :  { %v1861_v38 = vpop.f32.mrf.mxu1  ;;  %v1901_v56 = vmax.f32 %v1899_v42, %v1900_v0 }
 0x510   :  { %v1862_v2 = vadd.f32 %v1861_v38, %v3671_v17  ;;  %v1945_v29 = vsel %vm353_vm2, %v1870_v43, -inf }
 0x511   :  { %v2290_v37 = vpop.f32.mrf.mxu1  ;;  %v1946_v24 = vmax.f32 %v1944_v55, %v1945_v29 }
 0x512   :  { %v1883_v9 = vadd.f32 %v2290_v37, %v3671_v17  ;;  %v1915_v12 = vsel %vm353_vm2, %v1862_v2, -inf }
 0x513   :  { %v1874_v20 = vpop.f32.mrf.mxu1  ;;  %v1916_v10 = vmax.f32 %v1914_v54, %v1915_v12 }
 0x514   :  { %v1932_v35 = vsel %vm353_vm2, %v1883_v9, -inf  ;;  %v1875_v8 = vadd.f32 %v1874_v20, %v3671_v17 }
 0x515   :  { %v1933_v61 = vmax.f32 %v1931_v18, %v1932_v35  ;;  %v2291_v32 = vpop.f32.mrf.mxu1 }
 0x516   :  { %v1902_v33 = vsel %vm353_vm2, %v1875_v8, -inf  ;;  %v1886_v47 = vadd.f32 %v2291_v32, %v3671_v17 }
 0x517   :  { %1951 = vst.msk [vmem:[#allocation2 + $0x10] sm:$0xff] %vm353_vm2, %v1933_v61  ;;  %v1903_v45 = vmax.f32 %v1901_v56, %v1902_v33  ;;  %v1877_v7 = vpop.f32.mrf.mxu1 }
 0x518   :  { %v1947_v34 = vsel %vm353_vm2, %v1886_v47, -inf  ;;  %v1878_v26 = vadd.f32 %v1877_v7, %v3671_v17 }
 0x519   :  { %1949 = vst.msk [vmem:[#allocation2] sm:$0xff] %vm353_vm2, %v1903_v45  ;;  %v1948_v57 = vmax.f32 %v1946_v24, %v1947_v34 }
 0x51a   :  { %v1917_v31 = vsel %vm353_vm2, %v1878_v26, -inf }
 0x51b   :  { %1952 = vst.msk [vmem:[#allocation2 + $0x18] sm:$0xff] %vm353_vm2, %v1948_v57  ;;  %v1918_v3 = vmax.f32 %v1916_v10, %v1917_v31 }
 0x51d   :  { %1950 = vst.msk [vmem:[#allocation2 + $0x8] sm:$0xff] %vm353_vm2, %v1918_v3 }
 0x51e   :  { %2338 = shalt.err (!%p2335_p4)
}
 0x51f   :  { %s2350_s27 = smov 128   ;;  %s2351_s28 = smov 8  }
 0x520   :  { %1964 = dma.vmem_to_hbm [thread:$0]  %s1959_s25, 512, %s3750_s6, [#allocation3], %s2350_s27, %s2350_s27, %s2351_s28  }
 0x521   :  { %2347 = dma.done.wait [#allocation3], 512  }
 0x522   :  { %2348 = vsyncadd [#allocation3], 4294966784 }
 0x523   :  { %1968 = vsyncpa [#allocation3], 1 }

</bundles_post_ra>
